<compile_context>
chip_gen: v7x
topology: tpu7x:2x2x1
jax: 0.10.0
libtpu: 0.0.40
codegen_flags: <defaults>
</compile_context>

<pallas_src>
import math

import jax
import jax.numpy as jnp
from jax import lax
from jax.experimental import pallas as pl
from jax.experimental.pallas import tpu as pltpu


def _round_up(x, m):
    return ((x + m - 1) // m) * m


def _fuse_kernel(meta_ref, f0_ref, f2_ref, node_tab_ref, edge_tab_ref,
                 w_ref, b_ref, pe_const_ref, out_ref):
    TM = meta_ref.shape[0]
    NN = node_tab_ref.shape[0]          # padded node-vocab rows
    NE = edge_tab_ref.shape[0]          # padded edge-vocab rows
    D = node_tab_ref.shape[1]

    meta = meta_ref[...]                # [TM, 8] int32 per-edge scalars
    edge_src = meta[:, 0:1]
    edge_type = meta[:, 1:2]
    edge_dst = meta[:, 2:3]
    order_src = meta[:, 3:4]
    order_type = meta[:, 4:5]
    order_dst = meta[:, 5:6]
    value_type = meta[:, 6:7]

    # --- node gathers: src & dst fused into ONE bf16 MXU matmul -------------
    idx_nd = jnp.concatenate([edge_src, edge_dst], axis=0)          # [2TM, 1]
    n_iota = lax.broadcasted_iota(jnp.int32, (2 * TM, NN), 1)
    oh_nd = (n_iota == idx_nd).astype(jnp.bfloat16)                 # exact one-hot
    nd = jnp.dot(oh_nd, node_tab_ref[...],
                 preferred_element_type=jnp.float32)                # [2TM, D] f32
    node0 = nd[:TM]
    node2 = nd[TM:]

    # --- edge gathers: (edge_emb[e] + edge_emb[o] + edge_emb[v]) in ONE matmul
    e_iota = lax.broadcasted_iota(jnp.int32, (TM, NE), 1)
    oh_e = ((e_iota == edge_type).astype(jnp.bfloat16)
            + (e_iota == order_type).astype(jnp.bfloat16)
            + (e_iota == value_type).astype(jnp.bfloat16))
    edge_sum = jnp.dot(oh_e, edge_tab_ref[...],
                       preferred_element_type=jnp.float32)          # [TM, D] f32

    # --- sin/cos positional encoding: cos(x) = sin(x + pi/2); constants are a
    #     resident [2, D] input (no per-step exp/iota/where).
    divf = pe_const_ref[0:1, :]                                     # [1, D]
    phase = pe_const_ref[1:2, :]                                    # [1, D]
    pe0 = jnp.sin(order_src.astype(jnp.float32) * divf + phase)     # [TM, D]
    pe2 = jnp.sin(order_dst.astype(jnp.float32) * divf + phase)

    # --- CLS projections: two bf16 matmuls, f32 accumulation (no concat) ----
    bias = b_ref[...]                                               # [1, D] f32
    proj0 = jnp.dot(f0_ref[...], w_ref[...],
                    preferred_element_type=jnp.float32) + bias
    proj2 = jnp.dot(f2_ref[...], w_ref[...],
                    preferred_element_type=jnp.float32) + bias

    inv3 = jnp.float32(1.0 / 3.0)
    out_ref[:, 0:D] = ((node0 + pe0 + proj0) * inv3).astype(out_ref.dtype)
    out_ref[:, D:2 * D] = (edge_sum * inv3).astype(out_ref.dtype)
    out_ref[:, 2 * D:3 * D] = ((node2 + pe2 + proj2) * inv3).astype(out_ref.dtype)


def prepare_params(params):
    """One-time parameter prep (call once, reuse across forward calls)."""
    n_nodes, D = params["node_emb"].shape
    n_edges = params["edge_emb"].shape[0]
    NN = _round_up(n_nodes, 128)
    NE = _round_up(n_edges, 128)

    node_tab = jnp.zeros((NN, D), jnp.bfloat16)
    node_tab = node_tab.at[:n_nodes].set(params["node_emb"].astype(jnp.bfloat16))
    edge_tab = jnp.zeros((NE, D), jnp.bfloat16)
    edge_tab = edge_tab.at[:n_edges].set(params["edge_emb"].astype(jnp.bfloat16))
    w = params["w_proj"].astype(jnp.bfloat16)
    b = params["b_proj"].reshape(1, D).astype(jnp.float32)

    j = jnp.arange(D, dtype=jnp.int32)
    divf = jnp.exp(((j // 2) * 2).astype(jnp.float32) * (-math.log(10000.0) / D))
    phase = jnp.where((j % 2) == 0, jnp.float32(0.0), jnp.float32(math.pi / 2.0))
    pe_const = jnp.stack([divf, phase], axis=0)                     # [2, D]

    return {"node_tab": node_tab, "edge_tab": edge_tab, "w": w, "b": b,
            "pe_const": pe_const}


def fuse_pallas(prep, meta, feat0, feat2, *, tm=512, out_dtype=jnp.float32):
    """meta: [R, 8] int32 (edge_src, edge_type, edge_dst, order_src,
    order_type, order_dst, value_type, pad).  Returns [R, 3, D]."""
    R = meta.shape[0]
    NN, D = prep["node_tab"].shape
    NE = prep["edge_tab"].shape[0]
    F = feat0.shape[1]

    TM = min(tm, _round_up(R, 8))
    R_pad = _round_up(R, TM)
    if R_pad != R:
        # Ragged-tail fallback only; callers that keep R % TM == 0 pay nothing.
        pad = R_pad - R
        meta = jnp.pad(meta, ((0, pad), (0, 0)))
        feat0 = jnp.pad(feat0, ((0, pad), (0, 0)))
        feat2 = jnp.pad(feat2, ((0, pad), (0, 0)))
    if feat0.dtype != jnp.bfloat16:
        feat0 = feat0.astype(jnp.bfloat16)
    if feat2.dtype != jnp.bfloat16:
        feat2 = feat2.astype(jnp.bfloat16)

    grid = (R_pad // TM,)
    out = pl.pallas_call(
        _fuse_kernel,
        grid=grid,
        in_specs=[
            pl.BlockSpec((TM, meta.shape[1]), lambda i: (i, 0)),  # per-edge scalars
            pl.BlockSpec((TM, F), lambda i: (i, 0)),              # CLS feats (src)
            pl.BlockSpec((TM, F), lambda i: (i, 0)),              # CLS feats (dst)
            pl.BlockSpec((NN, D), lambda i: (0, 0)),              # node table (resident)
            pl.BlockSpec((NE, D), lambda i: (0, 0)),              # edge table (resident)
            pl.BlockSpec((F, D), lambda i: (0, 0)),               # proj weight (resident)
            pl.BlockSpec((1, D), lambda i: (0, 0)),               # proj bias
            pl.BlockSpec((2, D), lambda i: (0, 0)),               # sincos constants
        ],
        out_specs=pl.BlockSpec((TM, 3 * D), lambda i: (i, 0)),
        out_shape=jax.ShapeDtypeStruct((R_pad, 3 * D), out_dtype),
        compiler_params=pltpu.CompilerParams(
            dimension_semantics=("parallel",)),
    )(meta, feat0, feat2, prep["node_tab"], prep["edge_tab"],
      prep["w"], prep["b"], prep["pe_const"])

    if R_pad != R:
        out = out[:R]
    return out.reshape(R, 3, D)


def graph_creator_forward_batched(prep, edge_src, edge_type, edge_dst,
                                  order_src, order_type, order_dst,
                                  value_type, feat0, feat2):
    """All B graphs fused in one kernel call; rows are the concatenated edges."""
    meta = jnp.stack([edge_src, edge_type, edge_dst, order_src, order_type,
                      order_dst, value_type, jnp.zeros_like(edge_src)],
                     axis=1).astype(jnp.int32)                    # [R, 8]
    node_edge_embedding = fuse_pallas(prep, meta, feat0, feat2)   # [R, 3, D]
    edge_attr = node_edge_embedding[:, 1, :]
    # get_hetero_data builds edge_index from the `orders` triples (o[0], o[2]).
    edge_index = jnp.stack([order_src, order_dst], axis=0)        # [2, R]
    # TODO(synk): HeteroData node de-duplication (Python dict over node ids) and
    # Batch.from_data_list have no Pallas equivalent; raw fused tensors returned.
    return node_edge_embedding, edge_attr, edge_index


def _reference(params, edge_src, edge_type, edge_dst,
               order_src, order_type, order_dst, value_type, feat0, feat2):
    """Pure-JAX f32 reference mirroring the PyTorch math."""
    D = params["node_emb"].shape[1]

    def sincos(pos):
        half = jnp.exp(jnp.arange(0, D, 2, dtype=jnp.float32)
                       * (-math.log(10000.0) / D))
        ang = pos.astype(jnp.float32)[:, None] * half[None, :]
        pe = jnp.zeros((pos.shape[0], D), jnp.float32)
        pe = pe.at[:, 0::2].set(jnp.sin(ang))
        pe = pe.at[:, 1::2].set(jnp.cos(ang))
        return pe

    pe = jnp.stack([jnp.take(params["node_emb"], edge_src, 0),
                    jnp.take(params["edge_emb"], edge_type, 0),
                    jnp.take(params["node_emb"], edge_dst, 0)], 1)
    po = jnp.stack([sincos(order_src),
                    jnp.take(params["edge_emb"], order_type, 0),
                    sincos(order_dst)], 1)
    proj = lambda f: f @ params["w_proj"] + params["b_proj"]
    pv = jnp.stack([proj(feat0),
                    jnp.take(params["edge_emb"], value_type, 0),
                    proj(feat2)], 1)
    return (pe + po + pv) / 3.0


if __name__ == "__main__":
    key = jax.random.PRNGKey(0)
    num_nodes, num_edge_types = 16, 8      # len(node_dict), len(edge_dict)
    D, F = 128, 768                        # embedding_dim, CodeBERT hidden
    E, B = 8, 2                            # edges per graph, graphs in batch

    ks = jax.random.split(key, 4)
    params = {
        "node_emb": jax.random.normal(ks[0], (num_nodes, D), jnp.float32),
        "edge_emb": jax.random.normal(ks[1], (num_edge_types, D), jnp.float32),
        "w_proj": jax.random.normal(ks[2], (F, D), jnp.float32) * 0.02,
        "b_proj": jax.random.normal(ks[3], (1, D), jnp.float32) * 0.02,
    }
    prep = prepare_params(params)          # one-time: off the per-call path

    # Build all B graphs, concatenated along the edge-row axis (R = B*E).
    names = ("edge_src", "edge_type", "edge_dst", "order_src",
             "order_type", "order_dst", "value_type")
    cols = {n: [] for n in names}
    f0s, f2s = [], []
    for g in range(B):
        kg = jax.random.fold_in(key, g + 1)
        kk = jax.random.split(kg, 9)
        cols["edge_src"].append(jax.random.randint(kk[0], (E,), 0, num_nodes))
        cols["edge_type"].append(jax.random.randint(kk[1], (E,), 0, num_edge_types))
        cols["edge_dst"].append(jax.random.randint(kk[2], (E,), 0, num_nodes))
        cols["order_src"].append(jax.random.randint(kk[3], (E,), 0, num_nodes))
        cols["order_type"].append(jax.random.randint(kk[4], (E,), 0, num_edge_types))
        cols["order_dst"].append(jax.random.randint(kk[5], (E,), 0, num_nodes))
        cols["value_type"].append(jax.random.randint(kk[6], (E,), 0, num_edge_types))
        # TODO(synk): CodeBERT tokenizer/encoder (ASTValueEmbedding) has no
        # Pallas equivalent; deterministic synthetic CLS features stand in
        # (produced directly in bf16, the kernel's native MXU input dtype).
        f0s.append(jax.random.normal(kk[7], (E, F), jnp.float32).astype(jnp.bfloat16))
        f2s.append(jax.random.normal(kk[8], (E, F), jnp.float32).astype(jnp.bfloat16))

    batched = {n: jnp.concatenate(cols[n]) for n in names}
    feat0 = jnp.concatenate(f0s, axis=0)
    feat2 = jnp.concatenate(f2s, axis=0)

    nee, edge_attr, edge_index = graph_creator_forward_batched(
        prep, batched["edge_src"], batched["edge_type"], batched["edge_dst"],
        batched["order_src"], batched["order_type"], batched["order_dst"],
        batched["value_type"], feat0, feat2)
    jax.block_until_ready((nee, edge_attr, edge_index))

    ref = _reference(params, batched["edge_src"], batched["edge_type"],
                     batched["edge_dst"], batched["order_src"],
                     batched["order_type"], batched["order_dst"],
                     batched["value_type"],
                     feat0.astype(jnp.float32), feat2.astype(jnp.float32))
    # bf16 matmul inputs / bf16 tables with f32 accumulation -> ~1e-3 abs error
    # vs the f32 reference.
    assert jnp.allclose(nee, ref, atol=1e-2, rtol=1e-2), "mismatch vs reference"
    assert jnp.allclose(edge_attr, ref[:, 1, :], atol=1e-2, rtol=1e-2)

    print("KERNEL_OK")
</pallas_src>

<mosaic_0001>
module attributes {stable_mosaic.version = 11 : i64} {
  func.func @_fuse_kernel(%arg0: i32, %arg1: memref<16x8xi32, #tpu.memory_space<vmem>>, %arg2: memref<16x768xbf16, #tpu.memory_space<vmem>>, %arg3: memref<16x768xbf16, #tpu.memory_space<vmem>>, %arg4: memref<128x128xbf16, #tpu.memory_space<vmem>>, %arg5: memref<128x128xbf16, #tpu.memory_space<vmem>>, %arg6: memref<768x128xbf16, #tpu.memory_space<vmem>>, %arg7: memref<1x128xf32, #tpu.memory_space<vmem>>, %arg8: memref<2x128xf32, #tpu.memory_space<vmem>>, %arg9: memref<16x384xf32, #tpu.memory_space<vmem>>) attributes {dimension_semantics = [#tpu.dimension_semantics<parallel>], iteration_bounds = array<i64: 1>, scalar_prefetch = 0 : i64, scratch_operands = 0 : i64, tpu.core_type = #tpu.core_type<tc>, window_params = [{transform_indices = @transform_0, window_bounds = array<i64: 16, 8>}, {transform_indices = @transform_1, window_bounds = array<i64: 16, 768>}, {transform_indices = @transform_2, window_bounds = array<i64: 16, 768>}, {pipeline_mode = #tpu.pipeline_mode<synchronous>, transform_indices = @transform_3, window_bounds = array<i64: 128, 128>}, {pipeline_mode = #tpu.pipeline_mode<synchronous>, transform_indices = @transform_4, window_bounds = array<i64: 128, 128>}, {pipeline_mode = #tpu.pipeline_mode<synchronous>, transform_indices = @transform_5, window_bounds = array<i64: 768, 128>}, {pipeline_mode = #tpu.pipeline_mode<synchronous>, transform_indices = @transform_6, window_bounds = array<i64: 1, 128>}, {pipeline_mode = #tpu.pipeline_mode<synchronous>, transform_indices = @transform_7, window_bounds = array<i64: 2, 128>}, {transform_indices = @transform_8, window_bounds = array<i64: 16, 384>}]} {
    %c0 = arith.constant 0 : index
    %c0_0 = arith.constant 0 : index
    %0 = vector.load %arg1[%c0, %c0_0] : memref<16x8xi32, #tpu.memory_space<vmem>>, vector<16x8xi32>
    %1 = vector.extract_strided_slice %0 {offsets = [0, 0], sizes = [16, 1], strides = [1, 1]} : vector<16x8xi32> to vector<16x1xi32>
    %2 = vector.extract_strided_slice %0 {offsets = [0, 1], sizes = [16, 1], strides = [1, 1]} : vector<16x8xi32> to vector<16x1xi32>
    %3 = vector.extract_strided_slice %0 {offsets = [0, 2], sizes = [16, 1], strides = [1, 1]} : vector<16x8xi32> to vector<16x1xi32>
    %4 = vector.extract_strided_slice %0 {offsets = [0, 3], sizes = [16, 1], strides = [1, 1]} : vector<16x8xi32> to vector<16x1xi32>
    %5 = vector.extract_strided_slice %0 {offsets = [0, 4], sizes = [16, 1], strides = [1, 1]} : vector<16x8xi32> to vector<16x1xi32>
    %6 = vector.extract_strided_slice %0 {offsets = [0, 5], sizes = [16, 1], strides = [1, 1]} : vector<16x8xi32> to vector<16x1xi32>
    %7 = vector.extract_strided_slice %0 {offsets = [0, 6], sizes = [16, 1], strides = [1, 1]} : vector<16x8xi32> to vector<16x1xi32>
    %8 = tpu.concatenate %1, %3 in 0 : vector<16x1xi32>, vector<16x1xi32> -> vector<32x1xi32>
    %9 = tpu.iota {dimensions = array<i32: 1>} : vector<32x128xi32>
    %10 = vector.broadcast %8 : vector<32x1xi32> to vector<32x128xi32>
    %11 = arith.cmpi eq, %9, %10 : vector<32x128xi32>
    %12 = arith.extui %11 : vector<32x128xi1> to vector<32x128xi32>
    %13 = arith.sitofp %12 : vector<32x128xi32> to vector<32x128xf32>
    %14 = arith.truncf %13 : vector<32x128xf32> to vector<32x128xbf16>
    %c0_1 = arith.constant 0 : index
    %c0_2 = arith.constant 0 : index
    %15 = vector.load %arg4[%c0_1, %c0_2] : memref<128x128xbf16, #tpu.memory_space<vmem>>, vector<128x128xbf16>
    %cst = arith.constant dense<0.000000e+00> : vector<32x128xf32>
    %16 = tpu.matmul %14, %15, %cst {dimension_numbers = #tpu.dot_dimension_numbers<[1], [0], [0], [1], [0, 0, 1, 1], [], []>} : vector<32x128xbf16>, vector<128x128xbf16>, vector<32x128xf32> -> vector<32x128xf32>
    %17 = vector.extract_strided_slice %16 {offsets = [0, 0], sizes = [16, 128], strides = [1, 1]} : vector<32x128xf32> to vector<16x128xf32>
    %18 = vector.extract_strided_slice %16 {offsets = [16, 0], sizes = [16, 128], strides = [1, 1]} : vector<32x128xf32> to vector<16x128xf32>
    %19 = tpu.iota {dimensions = array<i32: 1>} : vector<16x128xi32>
    %20 = vector.broadcast %2 : vector<16x1xi32> to vector<16x128xi32>
    %21 = arith.cmpi eq, %19, %20 : vector<16x128xi32>
    %22 = arith.extui %21 : vector<16x128xi1> to vector<16x128xi32>
    %23 = arith.sitofp %22 : vector<16x128xi32> to vector<16x128xf32>
    %24 = arith.truncf %23 : vector<16x128xf32> to vector<16x128xbf16>
    %25 = vector.broadcast %5 : vector<16x1xi32> to vector<16x128xi32>
    %26 = arith.cmpi eq, %19, %25 : vector<16x128xi32>
    %27 = arith.extui %26 : vector<16x128xi1> to vector<16x128xi32>
    %28 = arith.sitofp %27 : vector<16x128xi32> to vector<16x128xf32>
    %29 = arith.truncf %28 : vector<16x128xf32> to vector<16x128xbf16>
    %30 = arith.addf %24, %29 : vector<16x128xbf16>
    %31 = vector.broadcast %7 : vector<16x1xi32> to vector<16x128xi32>
    %32 = arith.cmpi eq, %19, %31 : vector<16x128xi32>
    %33 = arith.extui %32 : vector<16x128xi1> to vector<16x128xi32>
    %34 = arith.sitofp %33 : vector<16x128xi32> to vector<16x128xf32>
    %35 = arith.truncf %34 : vector<16x128xf32> to vector<16x128xbf16>
    %36 = arith.addf %30, %35 : vector<16x128xbf16>
    %c0_3 = arith.constant 0 : index
    %c0_4 = arith.constant 0 : index
    %37 = vector.load %arg5[%c0_3, %c0_4] : memref<128x128xbf16, #tpu.memory_space<vmem>>, vector<128x128xbf16>
    %cst_5 = arith.constant dense<0.000000e+00> : vector<16x128xf32>
    %38 = tpu.matmul %36, %37, %cst_5 {dimension_numbers = #tpu.dot_dimension_numbers<[1], [0], [0], [1], [0, 0, 1, 1], [], []>} : vector<16x128xbf16>, vector<128x128xbf16>, vector<16x128xf32> -> vector<16x128xf32>
    %c0_6 = arith.constant 0 : index
    %c0_7 = arith.constant 0 : index
    %39 = vector.load %arg8[%c0_6, %c0_7] : memref<2x128xf32, #tpu.memory_space<vmem>>, vector<1x128xf32>
    %c1 = arith.constant 1 : index
    %c0_8 = arith.constant 0 : index
    %40 = vector.load %arg8[%c1, %c0_8] : memref<2x128xf32, #tpu.memory_space<vmem>>, vector<1x128xf32>
    %41 = arith.sitofp %4 : vector<16x1xi32> to vector<16x1xf32>
    %42 = vector.broadcast %41 : vector<16x1xf32> to vector<16x128xf32>
    %43 = vector.broadcast %39 : vector<1x128xf32> to vector<16x128xf32>
    %44 = arith.mulf %42, %43 : vector<16x128xf32>
    %45 = vector.broadcast %40 : vector<1x128xf32> to vector<16x128xf32>
    %46 = arith.addf %44, %45 : vector<16x128xf32>
    %47 = math.sin %46 : vector<16x128xf32>
    %48 = arith.sitofp %6 : vector<16x1xi32> to vector<16x1xf32>
    %49 = vector.broadcast %48 : vector<16x1xf32> to vector<16x128xf32>
    %50 = vector.broadcast %39 : vector<1x128xf32> to vector<16x128xf32>
    %51 = arith.mulf %49, %50 : vector<16x128xf32>
    %52 = vector.broadcast %40 : vector<1x128xf32> to vector<16x128xf32>
    %53 = arith.addf %51, %52 : vector<16x128xf32>
    %54 = math.sin %53 : vector<16x128xf32>
    %c0_9 = arith.constant 0 : index
    %c0_10 = arith.constant 0 : index
    %55 = vector.load %arg7[%c0_9, %c0_10] : memref<1x128xf32, #tpu.memory_space<vmem>>, vector<1x128xf32>
    %c0_11 = arith.constant 0 : index
    %c0_12 = arith.constant 0 : index
    %56 = vector.load %arg2[%c0_11, %c0_12] : memref<16x768xbf16, #tpu.memory_space<vmem>>, vector<16x768xbf16>
    %c0_13 = arith.constant 0 : index
    %c0_14 = arith.constant 0 : index
    %57 = vector.load %arg6[%c0_13, %c0_14] : memref<768x128xbf16, #tpu.memory_space<vmem>>, vector<768x128xbf16>
    %cst_15 = arith.constant dense<0.000000e+00> : vector<16x128xf32>
    %58 = tpu.matmul %56, %57, %cst_15 {dimension_numbers = #tpu.dot_dimension_numbers<[1], [0], [0], [1], [0, 0, 1, 1], [], []>} : vector<16x768xbf16>, vector<768x128xbf16>, vector<16x128xf32> -> vector<16x128xf32>
    %59 = vector.broadcast %55 : vector<1x128xf32> to vector<16x128xf32>
    %60 = arith.addf %58, %59 : vector<16x128xf32>
    %c0_16 = arith.constant 0 : index
    %c0_17 = arith.constant 0 : index
    %61 = vector.load %arg3[%c0_16, %c0_17] : memref<16x768xbf16, #tpu.memory_space<vmem>>, vector<16x768xbf16>
    %c0_18 = arith.constant 0 : index
    %c0_19 = arith.constant 0 : index
    %62 = vector.load %arg6[%c0_18, %c0_19] : memref<768x128xbf16, #tpu.memory_space<vmem>>, vector<768x128xbf16>
    %cst_20 = arith.constant dense<0.000000e+00> : vector<16x128xf32>
    %63 = tpu.matmul %61, %62, %cst_20 {dimension_numbers = #tpu.dot_dimension_numbers<[1], [0], [0], [1], [0, 0, 1, 1], [], []>} : vector<16x768xbf16>, vector<768x128xbf16>, vector<16x128xf32> -> vector<16x128xf32>
    %64 = vector.broadcast %55 : vector<1x128xf32> to vector<16x128xf32>
    %65 = arith.addf %63, %64 : vector<16x128xf32>
    %66 = arith.addf %17, %47 : vector<16x128xf32>
    %67 = arith.addf %66, %60 : vector<16x128xf32>
    %cst_21 = arith.constant 0.333333343 : f32
    %68 = vector.broadcast %cst_21 : f32 to vector<16x128xf32>
    %69 = arith.mulf %67, %68 : vector<16x128xf32>
    %c0_22 = arith.constant 0 : index
    %c0_23 = arith.constant 0 : index
    %70 = vector.load %arg9[%c0_22, %c0_23] : memref<16x384xf32, #tpu.memory_space<vmem>>, vector<16x128xf32>
    tpu.vector_store %arg9[%c0_22, %c0_23], %69 {strides = array<i32>} : memref<16x384xf32, #tpu.memory_space<vmem>>, vector<16x128xf32>,
    %cst_24 = arith.constant 0.333333343 : f32
    %71 = vector.broadcast %cst_24 : f32 to vector<16x128xf32>
    %72 = arith.mulf %38, %71 : vector<16x128xf32>
    %c0_25 = arith.constant 0 : index
    %c128 = arith.constant 128 : index
    %73 = vector.load %arg9[%c0_25, %c128] : memref<16x384xf32, #tpu.memory_space<vmem>>, vector<16x128xf32>
    tpu.vector_store %arg9[%c0_25, %c128], %72 {strides = array<i32>} : memref<16x384xf32, #tpu.memory_space<vmem>>, vector<16x128xf32>,
    %74 = arith.addf %18, %54 : vector<16x128xf32>
    %75 = arith.addf %74, %65 : vector<16x128xf32>
    %cst_26 = arith.constant 0.333333343 : f32
    %76 = vector.broadcast %cst_26 : f32 to vector<16x128xf32>
    %77 = arith.mulf %75, %76 : vector<16x128xf32>
    %c0_27 = arith.constant 0 : index
    %c256 = arith.constant 256 : index
    %78 = vector.load %arg9[%c0_27, %c256] : memref<16x384xf32, #tpu.memory_space<vmem>>, vector<16x128xf32>
    tpu.vector_store %arg9[%c0_27, %c256], %77 {strides = array<i32>} : memref<16x384xf32, #tpu.memory_space<vmem>>, vector<16x128xf32>,
    return
  }
  func.func @transform_0(%arg0: i32) -> (i32, i32) {
    %c0_i32 = arith.constant 0 : i32
    %c0_i32_0 = arith.constant 0 : i32
    return %arg0, %c0_i32 : i32, i32
  }
  func.func @transform_1(%arg0: i32) -> (i32, i32) {
    %c0_i32 = arith.constant 0 : i32
    %c0_i32_0 = arith.constant 0 : i32
    return %arg0, %c0_i32 : i32, i32
  }
  func.func @transform_2(%arg0: i32) -> (i32, i32) {
    %c0_i32 = arith.constant 0 : i32
    %c0_i32_0 = arith.constant 0 : i32
    return %arg0, %c0_i32 : i32, i32
  }
  func.func @transform_3(%arg0: i32) -> (i32, i32) {
    %c0_i32 = arith.constant 0 : i32
    %c0_i32_0 = arith.constant 0 : i32
    %c0_i32_1 = arith.constant 0 : i32
    return %c0_i32, %c0_i32_0 : i32, i32
  }
  func.func @transform_4(%arg0: i32) -> (i32, i32) {
    %c0_i32 = arith.constant 0 : i32
    %c0_i32_0 = arith.constant 0 : i32
    %c0_i32_1 = arith.constant 0 : i32
    return %c0_i32, %c0_i32_0 : i32, i32
  }
  func.func @transform_5(%arg0: i32) -> (i32, i32) {
    %c0_i32 = arith.constant 0 : i32
    %c0_i32_0 = arith.constant 0 : i32
    %c0_i32_1 = arith.constant 0 : i32
    return %c0_i32, %c0_i32_0 : i32, i32
  }
  func.func @transform_6(%arg0: i32) -> (i32, i32) {
    %c0_i32 = arith.constant 0 : i32
    %c0_i32_0 = arith.constant 0 : i32
    %c0_i32_1 = arith.constant 0 : i32
    return %c0_i32, %c0_i32_0 : i32, i32
  }
  func.func @transform_7(%arg0: i32) -> (i32, i32) {
    %c0_i32 = arith.constant 0 : i32
    %c0_i32_0 = arith.constant 0 : i32
    %c0_i32_1 = arith.constant 0 : i32
    return %c0_i32, %c0_i32_0 : i32, i32
  }
  func.func @transform_8(%arg0: i32) -> (i32, i32) {
    %c0_i32 = arith.constant 0 : i32
    %c0_i32_0 = arith.constant 0 : i32
    return %arg0, %c0_i32 : i32, i32
  }
}

</mosaic_0001>

<bundles_post_ra>
// kernel: tpu_custom_call.1
= control target key start
LH: loop header
LB: loop body
LE: loop exit
PB: predicated region body
PF: predicated region fallthrough
CT: control target
= control target key end

     0   :  { %13 = vsyncpa [#allocation3], 0  ;;  %s2960_s0 = inlined_call_operand.vmem [shape: s32[16,8], index: 0, kind: input, shape index: {}]   ;;  %s2961_s1 = inlined_call_operand.hbm [shape: bf16[16,768], index: 1, kind: input, shape index: {}]   ;;  %s2962_s2 = inlined_call_operand.hbm [shape: bf16[16,768], index: 2, kind: input, shape index: {}]   ;;  %s2963_s3 = inlined_call_operand.hbm [shape: bf16[128,128], index: 3, kind: input, shape index: {}]   ;;  %s2964_s4 = inlined_call_operand.hbm [shape: bf16[128,128], index: 4, kind: input, shape index: {}]   ;;  %s2965_s5 = inlined_call_operand.hbm [shape: bf16[768,128], index: 5, kind: input, shape index: {}]   ;;  %s2966_s6 = inlined_call_operand.vmem [shape: f32[1,128], index: 6, kind: input, shape index: {}]   ;;  %s2967_s7 = inlined_call_operand.vmem [shape: f32[2,128], index: 7, kind: input, shape index: {}]   ;;  %s2968_s8 = inlined_call_operand.hbm [shape: f32[16,384], index: 8, kind: output, shape index: {}]  }
   0x1   :  { %14 = vsyncpa [#allocation6], 0 }
   0x2   :  { %15 = vsyncpa [#allocation9], 0 }
   0x3   :  { %16 = vsyncpa [#allocation4], 0  ;;  %s2185_s27 = smov [#allocation5]   ;;  %s2045_s9 = scalar_lea.hbm %s2962_s2, 768 }
   0x4   :  { %s36_s28 = sshll.u32 %s2185_s27, 4  ;;  %p2046_p0 = scmp.ne.s32.totalorder %s2962_s2, %s2045_s9  ;;  %s37_s28 = int_to_ptr.vmem [resolvable:$true] %s36_s28 }
   0x5   :  { %p2049_p1 = scmp.lt.u32.totalorder %s2045_s9, %s2962_s2 }
   0x7   :  { %p2051_p2 = pnand %p2049_p1, %p2046_p0 }
   0x9   :  { %2054 = shalt.err (!%p2051_p2)
}
   0xa   :  { %s2055_s14 = scalar_lea.vmem %s37_s28, 768  ;;  %p2060_p4 = scmp.lt.s32.totalorder %s37_s28, %s37_s28 }
   0xb   :  { %p2056_p3 = scmp.ne.s32.totalorder %s37_s28, %s2055_s14  ;;  %p2061_p5 = scmp.lt.s32.totalorder %s2055_s14, %s2055_s14 }
   0xd   :  { %p2062_p6 = por %p2061_p5, %p2060_p4 }
   0xf   :  { %p2063_p7 = pnand %p2062_p6, %p2056_p3 }
  0x11   :  { %2066 = shalt.err (!%p2063_p7)
}
  0x12   :  { %s2186_s15 = smov 384   ;;  %s2187_s16 = smov 24  }
  0x13   :  { %42 = dma.hbm_to_vmem [thread:$0]  %s2962_s2, 768, %s37_s28, [#allocation6], %s2186_s15, %s2186_s15, %s2187_s16  }
  0x14   :  { %s2188_s19 = smov [#allocation8]   ;;  %s2189_s21 = smov [#allocation2]  }
  0x15   :  { %s60_s20 = sshll.u32 %s2188_s19, 4  ;;  %s24_s22 = sshll.u32 %s2189_s21, 4  ;;  %s61_s20 = int_to_ptr.vmem [resolvable:$true] %s60_s20  ;;  %s25_s22 = int_to_ptr.vmem [resolvable:$true] %s24_s22 }
  0x16   :  { %s2067_s25 = scalar_lea.hbm %s2964_s4, 1024 }
  0x17   :  { %p2068_p8 = scmp.ne.s32.totalorder %s2964_s4, %s2067_s25  ;;  %p2071_p9 = scmp.lt.u32.totalorder %s2067_s25, %s2964_s4 }
  0x19   :  { %p2073_p10 = pnand %p2071_p9, %p2068_p8 }
  0x1b   :  { %2076 = shalt.err (!%p2073_p10)
}
  0x1c   :  { %s2077_s2 = scalar_lea.vmem %s61_s20, 1024  ;;  %p2082_p12 = scmp.lt.s32.totalorder %s61_s20, %s61_s20 }
  0x1d   :  { %p2078_p11 = scmp.ne.s32.totalorder %s61_s20, %s2077_s2  ;;  %p2083_p13 = scmp.lt.s32.totalorder %s2077_s2, %s2077_s2 }
  0x1f   :  { %p2084_p0 = por %p2083_p13, %p2082_p12 }
  0x21   :  { %p2085_p1 = pnand %p2084_p0, %p2078_p11 }
  0x23   :  { %2088 = shalt.err (!%p2085_p1)
}
  0x24   :  { %s2190_s28 = smov 64   ;;  %s2191_s9 = smov 4  }
  0x25   :  { %66 = dma.hbm_to_vmem [thread:$0]  %s2964_s4, 1024, %s61_s20, [#allocation9], %s2190_s28, %s2190_s28, %s2191_s9  }
  0x26   :  { %s2089_s14 = scalar_lea.hbm %s2961_s1, 768 }
  0x27   :  { %p2090_p2 = scmp.ne.s32.totalorder %s2961_s1, %s2089_s14  ;;  %p2093_p3 = scmp.lt.u32.totalorder %s2089_s14, %s2961_s1 }
  0x29   :  { %p2095_p4 = pnand %p2093_p3, %p2090_p2 }
  0x2b   :  { %2098 = shalt.err (!%p2095_p4)
}
  0x2c   :  { %s2099_s23 = scalar_lea.vmem %s25_s22, 768  ;;  %p2104_p6 = scmp.lt.s32.totalorder %s25_s22, %s25_s22 }
  0x2d   :  { %p2100_p5 = scmp.ne.s32.totalorder %s25_s22, %s2099_s23  ;;  %p2105_p7 = scmp.lt.s32.totalorder %s2099_s23, %s2099_s23 }
  0x2f   :  { %p2106_p8 = por %p2105_p7, %p2104_p6 }
  0x31   :  { %p2107_p9 = pnand %p2106_p8, %p2100_p5 }
  0x33   :  { %2110 = shalt.err (!%p2107_p9)
}
  0x34   :  { %30 = dma.hbm_to_vmem [thread:$0]  %s2961_s1, 768, %s25_s22, [#allocation3], %s2186_s15, %s2186_s15, %s2187_s16  }
  0x35   :  { %s2192_s24 = smov [#allocation7]   ;;  %s2193_s26 = smov [#allocation10]  }
  0x36   :  { %s48_s25 = sshll.u32 %s2192_s24, 4  ;;  %s72_s27 = sshll.u32 %s2193_s26, 4  ;;  %s49_s25 = int_to_ptr.vmem [resolvable:$true] %s48_s25  ;;  %s73_s27 = int_to_ptr.vmem [resolvable:$true] %s72_s27 }
  0x37   :  { %s2111_s2 = scalar_lea.hbm %s2963_s3, 1024 }
  0x38   :  { %p2112_p10 = scmp.ne.s32.totalorder %s2963_s3, %s2111_s2  ;;  %p2115_p11 = scmp.lt.u32.totalorder %s2111_s2, %s2963_s3 }
  0x3a   :  { %p2117_p12 = pnand %p2115_p11, %p2112_p10 }
  0x3c   :  { %2120 = shalt.err (!%p2117_p12)
}
  0x3d   :  { %s2121_s1 = scalar_lea.vmem %s49_s25, 1024  ;;  %p2126_p0 = scmp.lt.s32.totalorder %s49_s25, %s49_s25 }
  0x3e   :  { %p2122_p13 = scmp.ne.s32.totalorder %s49_s25, %s2121_s1  ;;  %p2127_p1 = scmp.lt.s32.totalorder %s2121_s1, %s2121_s1 }
  0x40   :  { %p2128_p2 = por %p2127_p1, %p2126_p0 }
  0x42   :  { %p2129_p3 = pnand %p2128_p2, %p2122_p13 }
  0x44   :  { %2132 = shalt.err (!%p2129_p3)
}
  0x45   :  { %54 = dma.hbm_to_vmem [thread:$0]  %s2963_s3, 1024, %s49_s25, [#allocation6], %s2190_s28, %s2190_s28, %s2191_s9  }
  0x46   :  { %s2133_s19 = scalar_lea.hbm %s2965_s5, 6144 }
  0x47   :  { %p2134_p4 = scmp.ne.s32.totalorder %s2965_s5, %s2133_s19  ;;  %p2137_p5 = scmp.lt.u32.totalorder %s2133_s19, %s2965_s5 }
  0x49   :  { %p2139_p6 = pnand %p2137_p5, %p2134_p4 }
  0x4b   :  { %2142 = shalt.err (!%p2139_p6)
}
  0x4c   :  { %s2143_s24 = scalar_lea.vmem %s73_s27, 6144  ;;  %p2148_p8 = scmp.lt.s32.totalorder %s73_s27, %s73_s27 }
  0x4d   :  { %p2144_p7 = scmp.ne.s32.totalorder %s73_s27, %s2143_s24  ;;  %p2149_p9 = scmp.lt.s32.totalorder %s2143_s24, %s2143_s24 }
  0x4f   :  { %p2150_p10 = por %p2149_p9, %p2148_p8 }
  0x51   :  { %p2151_p11 = pnand %p2150_p10, %p2144_p7 }
  0x53   :  { %2154 = shalt.err (!%p2151_p11)
}
  0x54   :  { %78 = dma.hbm_to_vmem [thread:$0]  %s2965_s5, 6144, %s73_s27, [#allocation9], %s2190_s28, %s2190_s28, %s2191_s9  }
  0x55   :  { %2177 = dma.done.wait [#allocation3], 768  }
  0x56   :  { %2178 = vsyncadd [#allocation3], 4294966528 }
  0x57   :  { %2179 = dma.done.wait [#allocation6], 1792  }
  0x58   :  { %2180 = vsyncadd [#allocation6], 4294965504 }
  0x59   :  { %2181 = dma.done.wait [#allocation9], 7168  }
  0x5a   :  { %2182 = vsyncadd [#allocation9], 4294960128  ;;  %v2194_v0 = vmov 1   ;;  %v2195_v1 = vmov 4   ;;  %v2196_v2 = vmov 0.0   ;;  %v2335_v3 = vld [vmem:[%s2960_s0] sm:$0xff]  ;;  %v105_v30 = vlaneseq }
  0x5b   :  { %1936 = vset.pattern.permute.xlu1 %v2194_v0  ;;  %1937 = vset.pattern.permute.xlu0 %v2195_v1  ;;  %s2197_s30 = smov 126   ;;  %v1947_v4 = vld [vmem:[#allocation8] sm:$0xff]   ;;  %v2342_v5 = vld [vmem:[%s2960_s0 + $0x8] sm:$0xff]  ;;  %v1949_v7 = vld [vmem:[#allocation8 + $0x10] sm:$0xff]   ;;  %v2198_v9 = vmov 6   ;;  %v2199_v15 = vmov 0   ;;  %v394_v27 = vcvt.s32.f32 %v2335_v3 }
  0x5c   :  { %1874 = vmatprep.subr.bf16.mxu1 %v2196_v2  ;;  %101 = vrot.lane.b32.xlu0 %v2335_v3, %s2197_s30  ;;  %v1948_v6 = vld [vmem:[#allocation8 + $0x8] sm:$0xff]   ;;  %v1950_v8 = vld [vmem:[#allocation8 + $0x18] sm:$0xff]   ;;  %v1951_v10 = vld [vmem:[#allocation8 + $0x20] sm:$0xff]   ;;  %vm2200_vm0 = vmmov 0   ;;  %v2201_v28 = vmov 3   ;;  %v395_v29 = vcvt.s32.f32 %v2342_v5  ;;  %v2368_v32 = vand.u32 127, %v105_v30 }
  0x5d   :  { %247 = vperm.xlu1 %1936, %v2335_v3   ;;  %1875 = vmatpush3.bf16.msra.mxu1 %v1947_v4  ;;  %v1953_v11 = vld [vmem:[#allocation7] sm:$0xff]   ;;  %v1952_v12 = vld [vmem:[#allocation8 + $0x28] sm:$0xff]   ;;  %v1957_v14 = vld [vmem:[#allocation7 + $0x10] sm:$0xff]   ;;  %v2202_v33 = vmov 5   ;;  %v2203_v57 = vmov 1.0|1.0  }
  0x5e   :  { %1876 = vmatprep.subr.bf16.mxu1 %v2196_v2  ;;  %1854 = vmatprep.subr.bf16.mxu0 %v1953_v11  ;;  %v1955_v13 = vld [vmem:[#allocation7 + $0x8] sm:$0xff]   ;;  %v1954_v16 = vld [vmem:[#allocation8 + $0x30] sm:$0xff]   ;;  %v1958_v17 = vld [vmem:[#allocation7 + $0x18] sm:$0xff]  }
  0x5f   :  { %1855 = vmatpush3.bf16.msra.mxu0 %v1953_v11  ;;  %1890 = vmatprep.mubr.msk.bf16.mxu1 %vm2200_vm0, %v2196_v2  ;;  %v1956_v18 = vld [vmem:[#allocation8 + $0x38] sm:$0xff]   ;;  %v1959_v19 = vld [vmem:[#allocation7 + $0x20] sm:$0xff]   ;;  %v1960_v20 = vld [vmem:[#allocation7 + $0x28] sm:$0xff]  }
  0x60   :  { %103 = vrot.lane.b32.xlu0 %v2342_v5, %s2197_s30  ;;  %1856 = vmatprep.subr.bf16.mxu0 %v1955_v13  ;;  %v1961_v21 = vld [vmem:[#allocation7 + $0x30] sm:$0xff]   ;;  %v1962_v23 = vld [vmem:[#allocation7 + $0x38] sm:$0xff]   ;;  %v2360_v24 = vld [vmem:[#allocation10 + $0xc0] sm:$0xff]  }
  0x61   :  { %250 = vperm.xlu1 %1936, %v2342_v5   ;;  %1877 = vmatpush3.bf16.msra.mxu1 %v1948_v6  ;;  %v2362_v26 = vld [vmem:[#allocation10 + $0x40] sm:$0xff]   ;;  %v2384_v52 = vld [vmem:[#allocation10 + $0xc8] sm:$0xff]   ;;  %v2391_v55 = vld [vmem:[#allocation10 + $0xd0] sm:$0xff]  }
  0x62   :  { %1878 = vmatprep.subr.bf16.mxu1 %v2196_v2  ;;  %v2382_v49 = vld [vmem:[#allocation10 + $0x80] sm:$0xff]   ;;  %v2388_v53 = vld [vmem:[#allocation10 + $0x88] sm:$0xff]   ;;  %v2396_v58 = vld [vmem:[#allocation10 + $0x90] sm:$0xff]  }
  0x63   :  { %1857 = vmatpush3.bf16.msra.mxu0 %v1955_v13  ;;  %v2000_v56 = vld [vmem:[#allocation2 + $0xc] ss:$24 sps:$4 sm:$0xff]   ;;  %v2399_v59 = vld [vmem:[#allocation10 + $0xd8] sm:$0xff]   ;;  %v2443_v11 = vld [vmem:[#allocation10 + $0x10] sm:$0xff]  }
  0x64   :  { %260 = vperm.xlu0 %1937, %v2335_v3   ;;  %1858 = vmatprep.subr.bf16.mxu0 %v1957_v14  ;;  %v2402_v60 = vld [vmem:[#allocation10 + $0x98] sm:$0xff]   ;;  %v2405_v61 = vld [vmem:[#allocation10 + $0xe0] sm:$0xff]   ;;  %v2411_v63 = vld [vmem:[#allocation10 + $0xe8] sm:$0xff]  }
  0x65   :  { %1938 = vset.pattern.permute.xlu1 %v2195_v1  ;;  %1879 = vmatpush3.bf16.msra.mxu1 %v1949_v7  ;;  %v2408_v62 = vld [vmem:[#allocation10 + $0xa0] sm:$0xff]   ;;  %v2414_v0 = vld [vmem:[#allocation10 + $0xa8] sm:$0xff]   ;;  %v2417_v1 = vld [vmem:[#allocation10 + $0xf0] sm:$0xff]  }
  0x66   :  { %263 = vperm.xlu1 %1938, %v2342_v5   ;;  %1880 = vmatprep.subr.bf16.mxu1 %v2196_v2  ;;  %v2426_v4 = vld [vmem:[#allocation10 + $0xb8] sm:$0xff]   ;;  %v2431_v6 = vld [vmem:[#allocation10] sm:$0xff]   ;;  %v2433_v7 = vld [vmem:[#allocation10 + $0x48] sm:$0xff]  }
  0x67   :  { %1859 = vmatpush3.bf16.msra.mxu0 %v1957_v14  ;;  %v2449_v13 = vld [vmem:[#allocation10 + $0x18] sm:$0xff]   ;;  %v2451_v14 = vld [vmem:[#allocation10 + $0x60] sm:$0xff]   ;;  %v2006_v30 = vld [vmem:[#allocation10 + $0x110] sm:$0xff]  }
  0x68   :  { %1940 = vset.pattern.permute.xlu0 %v2198_v9  ;;  %1860 = vmatprep.subr.bf16.mxu0 %v1958_v17 }
  0x69   :  { %277 = vperm.xlu0 %1940, %v2342_v5   ;;  %1881 = vmatpush3.bf16.msra.mxu1 %v1950_v8  ;;  %v2437_v8 = vld [vmem:[#allocation10 + $0x8] sm:$0xff]  }
  0x6a   :  { %1939 = vset.pattern.permute.xlu1 %v2198_v9  ;;  %1882 = vmatprep.subr.bf16.mxu1 %v2196_v2  ;;  %v2022_v9 = vld [vmem:[#allocation5 + $0x4] ss:$24 sps:$4 sm:$0xff]  }
  0x6b   :  { %274 = vperm.xlu1 %1939, %v2335_v3   ;;  %1861 = vmatpush3.bf16.msra.mxu0 %v1958_v17  ;;  %v2461_v17 = vld [vmem:[#allocation10 + $0x28] sm:$0xff]  }
  0x6c   :  { %1862 = vmatprep.subr.bf16.mxu0 %v1959_v19 }
  0x6d   :  { %1942 = vset.pattern.permute.xlu0 %v2199_v15  ;;  %1883 = vmatpush3.bf16.msra.mxu1 %v1951_v10  ;;  %v2439_v10 = vld [vmem:[#allocation10 + $0x50] sm:$0xff]  }
  0x6e   :  { %1884 = vmatprep.subr.bf16.mxu1 %v2196_v2 }
  0x6f   :  { %1941 = vset.pattern.permute.xlu1 %v2199_v15  ;;  %1863 = vmatpush3.bf16.msra.mxu0 %v1959_v19  ;;  %v2455_v15 = vld [vmem:[#allocation10 + $0x20] sm:$0xff]   ;;  %v2467_v19 = vld [vmem:[#allocation10 + $0x30] sm:$0xff]  }
  0x70   :  { %108 = vperm.xlu1 %1941, %v2335_v3   ;;  %1864 = vmatprep.subr.bf16.mxu0 %v1960_v20  ;;  %v2423_v3 = vld [vmem:[#allocation10 + $0xf8] sm:$0xff]  }
  0x71   :  { %1885 = vmatpush3.bf16.msra.mxu1 %v1952_v12  ;;  %v2445_v12 = vld [vmem:[#allocation10 + $0x58] sm:$0xff]  }
  0x72   :  { %1886 = vmatprep.subr.bf16.mxu1 %v2196_v2 }
  0x73   :  { %1865 = vmatpush3.bf16.msra.mxu0 %v1960_v20  ;;  %v2469_v20 = vld [vmem:[#allocation10 + $0x78] sm:$0xff]  }
  0x74   :  { %111 = vperm.xlu1 %1941, %v2342_v5   ;;  %1866 = vmatprep.subr.bf16.mxu0 %v1961_v21  ;;  %v1998_v5 = vld [vmem:[#allocation2 + $0x8] ss:$24 sps:$4 sm:$0xff]  }
  0x75   :  { %1887 = vmatpush3.bf16.msra.mxu1 %v1954_v16  ;;  %v2457_v16 = vld [vmem:[#allocation10 + $0x68] sm:$0xff]  }
  0x76   :  { %1888 = vmatprep.subr.bf16.mxu1 %v2196_v2 }
  0x77   :  { %1867 = vmatpush3.bf16.msra.mxu0 %v1961_v21  ;;  %v1994_v21 = vld [vmem:[#allocation10 + $0x38] sm:$0xff]  }
  0x78   :  { %1868 = vmatprep.subr.bf16.mxu0 %v1962_v23 }
  0x79   :  { %1889 = vmatpush3.bf16.msra.mxu1 %v1956_v18  ;;  %v2463_v18 = vld [vmem:[#allocation10 + $0x70] sm:$0xff]  }
  0x7a   :  { %1744 = vmatprep.subr.bf16.mxu1 %v2360_v24 }
  0x7b   :  { %1869 = vmatpush3.bf16.msra.mxu0 %v1962_v23  ;;  %v2020_v23 = vld [vmem:[#allocation5] ss:$24 sps:$4 sm:$0xff]  }
  0x7c   :  { %1722 = vmatprep.subr.bf16.mxu0 %v2362_v26 }
  0xce   :  { %v102_v22 = vpop.permute.xlu0 %101 }
  0xcf   :  { %114 = vperm.xlu0 %1942, %v102_v22   ;;  %v2473_v22 = vld [vmem:[#allocation10 + $0x140] sm:$0xff]  }
  0xd2   :  { %v104_v25 = vpop.permute.xlu0 %103 }
  0xd3   :  { %117 = vperm.xlu1 %1941, %v104_v25   ;;  %1944 = vset.pattern.permute.xlu0 %v2201_v28  ;;  %v2002_v25 = vld [vmem:[#allocation10 + $0x100] sm:$0xff]  }
  0xd4   :  { %403 = vperm.xlu0 %1944, %v395_v29  }
  0xd7   :  { %1943 = vset.pattern.permute.xlu1 %v2201_v28  ;;  %v2004_v28 = vld [vmem:[#allocation10 + $0x108] sm:$0xff]  }
  0xd8   :  { %398 = vperm.xlu1 %1943, %v394_v27   ;;  %1946 = vset.pattern.permute.xlu0 %v2202_v33 }
  0xdc   :  { %v248_v31 = vpop.permute.xlu1 %247  ;;  %1945 = vset.pattern.permute.xlu1 %v2202_v33  ;;  %v2008_v33 = vld [vmem:[#allocation10 + $0x118] sm:$0xff]  }
  0xdd   :  { %627 = vperm.xlu1 %1945, %v394_v27   ;;  %vm252_vm1 = vcmp.eq.s32.totalorder %v2368_v32, %v248_v31  ;;  %v2025_v27 = vld [vmem:[#allocation5 + $0x14] ss:$24 sps:$4 sm:$0xff]  }
  0xde   :  { %v1610_v35 = vsel %vm252_vm1, 1.0, %v2196_v2  ;;  %v2007_v31 = vld [vmem:[#allocation10 + $0x158] sm:$0xff]  }
  0xe0   :  { %v251_v34 = vpop.permute.xlu1 %250 }
  0xe1   :  { %vm253_vm2 = vcmp.eq.s32.totalorder %v2368_v32, %v251_v34  ;;  %631 = vperm.xlu1 %1945, %v395_v29   ;;  %v2005_v29 = vld [vmem:[#allocation10 + $0x150] sm:$0xff]   ;;  %v2009_v34 = vld [vmem:[#allocation10 + $0x160] sm:$0xff]  }
  0xe2   :  { %v1611_v36 = vsel %vm253_vm2, 1.0, %v2196_v2 }
  0xe3   :  { %v261_v37 = vpop.permute.xlu0 %260  ;;  %v258_v40 = vpack.c.bf16 %v1611_v36, %v1610_v35  ;;  %v2010_v35 = vld [vmem:[#allocation10 + $0x120] sm:$0xff]   ;;  %v2011_v36 = vld [vmem:[#allocation10 + $0x168] sm:$0xff]  }
  0xe4   :  { %vm265_vm3 = vcmp.eq.s32.totalorder %v2368_v32, %v261_v37  ;;  %v2012_v37 = vld [vmem:[#allocation10 + $0x128] sm:$0xff]  }
  0xe5   :  { %v264_v38 = vpop.permute.xlu1 %263  ;;  %v1612_v39 = vsel %vm265_vm3, 1.0, %v2196_v2 }
  0xe6   :  { %vm266_vm4 = vcmp.eq.s32.totalorder %v2368_v32, %v264_v38  ;;  %v2013_v38 = vld [vmem:[#allocation10 + $0x170] sm:$0xff]  }
  0xe7   :  { %v1613_v41 = vsel %vm266_vm4, 1.0, %v2196_v2 }
  0xe8   :  { %v271_v42 = vpack.c.bf16 %v1613_v41, %v1612_v39  ;;  %v278_v43 = vpop.permute.xlu0 %277  ;;  %v2014_v39 = vld [vmem:[#allocation10 + $0x130] sm:$0xff]   ;;  %v2016_v41 = vld [vmem:[#allocation10 + $0x138] sm:$0xff]  }
  0xe9   :  { %vm280_vm5 = vcmp.eq.s32.totalorder %v2368_v32, %v278_v43 }
  0xea   :  { %v275_v44 = vpop.permute.xlu1 %274  ;;  %v272_v45 = vadd.bf16 %v271_v42, %v258_v40  ;;  %v1615_v46 = vsel %vm280_vm5, 1.0, %v2196_v2  ;;  %v2015_v40 = vld [vmem:[#allocation10 + $0x178] sm:$0xff]  }
  0xeb   :  { %vm279_vm6 = vcmp.eq.s32.totalorder %v2368_v32, %v275_v44  ;;  %v2023_v42 = vld [vmem:[#allocation5 + $0x10] ss:$24 sps:$4 sm:$0xff]  }
  0xec   :  { %v1614_v47 = vsel %vm279_vm6, 1.0, %v2196_v2  ;;  %v2420_v2 = vld [vmem:[#allocation10 + $0xb0] sm:$0xff]  }
  0xed   :  { %v285_v48 = vpack.c.bf16 %v1615_v46, %v1614_v47  ;;  %v2019_v46 = vld [vmem:[#allocation2 + $0x14] ss:$24 sps:$4 sm:$0xff]   ;;  %v2017_v47 = vld [vmem:[#allocation2 + $0x10] ss:$24 sps:$4 sm:$0xff]  }
  0xef   :  { %v286_v50 = vadd.bf16 %v285_v48, %v272_v45  ;;  %v109_v51 = vpop.permute.xlu1 %108  ;;  %v1997_v45 = vld [vmem:[#allocation2 + $0x4] ss:$24 sps:$4 sm:$0xff]  }
  0xf0   :  { %vm119_vm7 = vcmp.eq.s32.totalorder %v2368_v32, %v109_v51  ;;  %v2028_v48 = vld [vmem:[#allocation5 + $0xc] ss:$24 sps:$4 sm:$0xff]  }
  0xf1   :  { %1891 = vmatmul.mubr.bf16.vlgmr.msra.gmra.mrb[0].mxu1 %v286_v50 }
  0xf2   :  { %1745 = vmatpush3.bf16.msra.mxu1 %v2382_v49  ;;  %1346 = vmatprep.mubr.bf16.mxu1 %v2000_v56 }
  0xf3   :  { %v112_v54 = vpop.permute.xlu1 %111  ;;  %1746 = vmatprep.subr.bf16.mxu1 %v2384_v52 }
  0xf4   :  { %vm120_vm8 = vcmp.eq.s32.totalorder %v2368_v32, %v112_v54 }
  0xf5   :  { %vm1606_vm9 = vmpackc.low %vm120_vm8, %vm119_vm7 }
  0xf6   :  { %1870 = vmatprep.mubr.msk.bf16.mxu0 %vm1606_vm9, %v2203_v57  ;;  %1747 = vmatpush3.bf16.msra.mxu1 %v2388_v53 }
  0xf7   :  { %1748 = vmatprep.subr.bf16.mxu1 %v2391_v55 }
  0xfa   :  { %1749 = vmatpush3.bf16.msra.mxu1 %v2396_v58 }
  0xfb   :  { %1750 = vmatprep.subr.bf16.mxu1 %v2399_v59 }
  0xfe   :  { %1751 = vmatpush3.bf16.msra.mxu1 %v2402_v60 }
  0xff   :  { %1752 = vmatprep.subr.bf16.mxu1 %v2405_v61 }
 0x102   :  { %1753 = vmatpush3.bf16.msra.mxu1 %v2408_v62 }
 0x103   :  { %1754 = vmatprep.subr.bf16.mxu1 %v2411_v63 }
 0x106   :  { %1755 = vmatpush3.bf16.msra.mxu1 %v2414_v0 }
 0x107   :  { %1756 = vmatprep.subr.bf16.mxu1 %v2417_v1 }
 0x10a   :  { %1757 = vmatpush3.bf16.msra.mxu1 %v2420_v2 }
 0x10b   :  { %1758 = vmatprep.subr.bf16.mxu1 %v2423_v3 }
 0x10e   :  { %1759 = vmatpush3.bf16.msra.mxu1 %v2426_v4 }
 0x10f   :  { %1788 = vmatprep.subr.bf16.mxu1 %v2362_v26  ;;  %v2003_v26 = vld [vmem:[#allocation10 + $0x148] sm:$0xff]  }
 0x111   :  { %1347 = vmatmul.mubr.bf16.vlgmr.msra.gmra.mrb[4].mxu1 %v1998_v5 }
 0x112   :  { %1789 = vmatpush3.bf16.msra.mxu1 %v2431_v6  ;;  %1464 = vmatprep.mubr.bf16.mxu1 %v2022_v9 }
 0x113   :  { %1790 = vmatprep.subr.bf16.mxu1 %v2433_v7 }
 0x116   :  { %1791 = vmatpush3.bf16.msra.mxu1 %v2437_v8 }
 0x117   :  { %1792 = vmatprep.subr.bf16.mxu1 %v2439_v10 }
 0x11a   :  { %1793 = vmatpush3.bf16.msra.mxu1 %v2443_v11 }
 0x11b   :  { %1794 = vmatprep.subr.bf16.mxu1 %v2445_v12 }
 0x11e   :  { %1795 = vmatpush3.bf16.msra.mxu1 %v2449_v13 }
 0x11f   :  { %1796 = vmatprep.subr.bf16.mxu1 %v2451_v14 }
 0x122   :  { %1797 = vmatpush3.bf16.msra.mxu1 %v2455_v15 }
 0x123   :  { %1798 = vmatprep.subr.bf16.mxu1 %v2457_v16 }
 0x126   :  { %1799 = vmatpush3.bf16.msra.mxu1 %v2461_v17 }
 0x127   :  { %1800 = vmatprep.subr.bf16.mxu1 %v2463_v18 }
 0x12a   :  { %1801 = vmatpush3.bf16.msra.mxu1 %v2467_v19 }
 0x12b   :  { %1802 = vmatprep.subr.bf16.mxu1 %v2469_v20 }
 0x12e   :  { %1803 = vmatpush3.bf16.msra.mxu1 %v1994_v21 }
 0x12f   :  { %1832 = vmatprep.subr.bf16.mxu1 %v2473_v22 }
 0x131   :  { %1465 = vmatmul.mubr.bf16.vlgmr.msra.gmra.mrb[8].mxu1 %v2020_v23 }
 0x132   :  { %1833 = vmatpush3.bf16.msra.mxu1 %v2002_v25  ;;  %1546 = vmatprep.mubr.bf16.mxu1 %v2025_v27 }
 0x133   :  { %1834 = vmatprep.subr.bf16.mxu1 %v2003_v26 }
 0x136   :  { %1835 = vmatpush3.bf16.msra.mxu1 %v2004_v28 }
 0x137   :  { %1836 = vmatprep.subr.bf16.mxu1 %v2005_v29 }
 0x13a   :  { %1837 = vmatpush3.bf16.msra.mxu1 %v2006_v30 }
 0x13b   :  { %1838 = vmatprep.subr.bf16.mxu1 %v2007_v31 }
 0x13e   :  { %1839 = vmatpush3.bf16.msra.mxu1 %v2008_v33 }
 0x13f   :  { %1840 = vmatprep.subr.bf16.mxu1 %v2009_v34 }
 0x142   :  { %1841 = vmatpush3.bf16.msra.mxu1 %v2010_v35 }
 0x143   :  { %1842 = vmatprep.subr.bf16.mxu1 %v2011_v36 }
 0x146   :  { %1843 = vmatpush3.bf16.msra.mxu1 %v2012_v37 }
 0x147   :  { %1844 = vmatprep.subr.bf16.mxu1 %v2013_v38 }
 0x14a   :  { %1845 = vmatpush3.bf16.msra.mxu1 %v2014_v39 }
 0x14b   :  { %1846 = vmatprep.subr.bf16.mxu1 %v2015_v40 }
 0x14e   :  { %1847 = vmatpush3.bf16.msra.mxu1 %v2016_v41  ;;  %v115_v43 = vpop.permute.xlu0 %114 }
 0x14f   :  { %vm121_vm10 = vcmp.eq.s32.totalorder %v2368_v32, %v115_v43 }
 0x151   :  { %1547 = vmatmul.mubr.bf16.vlgmr.msra.gmra.mrb[12].mxu1 %v2023_v42 }
 0x152   :  { %v118_v44 = vpop.permute.xlu1 %117 }
 0x153   :  { %vm122_vm11 = vcmp.eq.s32.totalorder %v2368_v32, %v118_v44  ;;  %v1995_v32 = vld [vmem:[#allocation2] ss:$24 sps:$4 sm:$0xff]  }
 0x154   :  { %vm1608_vm12 = vmpackc.low %vm122_vm11, %vm121_vm10 }
 0x155   :  { %1871 = vmatmul.mubr.msk.bf16.vlgmr.msra.gmra.mrb[0].mxu0 %vm1608_vm12, %v2203_v57 }
 0x156   :  { %1723 = vmatpush3.bf16.msra.mxu0 %v2431_v6  ;;  %1305 = vmatprep.mubr.bf16.mxu0 %v1997_v45 }
 0x157   :  { %1724 = vmatprep.subr.bf16.mxu0 %v2433_v7  ;;  %v399_v50 = vpop.permute.xlu1 %398 }
 0x15a   :  { %1725 = vmatpush3.bf16.msra.mxu0 %v2437_v8 }
 0x15b   :  { %1726 = vmatprep.subr.bf16.mxu0 %v2439_v10 }
 0x15e   :  { %1727 = vmatpush3.bf16.msra.mxu0 %v2443_v11 }
 0x15f   :  { %1728 = vmatprep.subr.bf16.mxu0 %v2445_v12 }
 0x162   :  { %1729 = vmatpush3.bf16.msra.mxu0 %v2449_v13 }
 0x163   :  { %1730 = vmatprep.subr.bf16.mxu0 %v2451_v14 }
 0x166   :  { %1731 = vmatpush3.bf16.msra.mxu0 %v2455_v15 }
 0x167   :  { %1732 = vmatprep.subr.bf16.mxu0 %v2457_v16 }
 0x16a   :  { %1733 = vmatpush3.bf16.msra.mxu0 %v2461_v17 }
 0x16b   :  { %1734 = vmatprep.subr.bf16.mxu0 %v2463_v18 }
 0x16e   :  { %1735 = vmatpush3.bf16.msra.mxu0 %v2467_v19 }
 0x16f   :  { %1736 = vmatprep.subr.bf16.mxu0 %v2469_v20 }
 0x172   :  { %1737 = vmatpush3.bf16.msra.mxu0 %v1994_v21 }
 0x173   :  { %1766 = vmatprep.subr.bf16.mxu0 %v2473_v22  ;;  %v2204_v22 = vmov 2102212464  }
 0x175   :  { %1306 = vmatmul.mubr.bf16.vlgmr.msra.gmra.mrb[4].mxu0 %v1995_v32  ;;  %v2207_v32 = vmov 683565275  }
 0x176   :  { %1767 = vmatpush3.bf16.msra.mxu0 %v2002_v25  ;;  %1387 = vmatprep.mubr.bf16.mxu0 %v2019_v46  ;;  %v2205_v25 = vmov 920167782  }
 0x177   :  { %1768 = vmatprep.subr.bf16.mxu0 %v2003_v26 }
 0x17a   :  { %1769 = vmatpush3.bf16.msra.mxu0 %v2004_v28 }
 0x17b   :  { %1770 = vmatprep.subr.bf16.mxu0 %v2005_v29 }
 0x17e   :  { %1771 = vmatpush3.bf16.msra.mxu0 %v2006_v30 }
 0x17f   :  { %1772 = vmatprep.subr.bf16.mxu0 %v2007_v31 }
 0x182   :  { %1773 = vmatpush3.bf16.msra.mxu0 %v2008_v33 }
 0x183   :  { %1774 = vmatprep.subr.bf16.mxu0 %v2009_v34 }
 0x186   :  { %1775 = vmatpush3.bf16.msra.mxu0 %v2010_v35 }
 0x187   :  { %1776 = vmatprep.subr.bf16.mxu0 %v2011_v36  ;;  %v2206_v36 = vmov 1326507024  }
 0x18a   :  { %1777 = vmatpush3.bf16.msra.mxu0 %v2012_v37 }
 0x18b   :  { %1778 = vmatprep.subr.bf16.mxu0 %v2013_v38 }
 0x18e   :  { %1779 = vmatpush3.bf16.msra.mxu0 %v2014_v39 }
 0x18f   :  { %1780 = vmatprep.subr.bf16.mxu0 %v2015_v40 }
 0x192   :  { %1781 = vmatpush3.bf16.msra.mxu0 %v2016_v41 }
 0x193   :  { %1810 = vmatprep.subr.bf16.mxu0 %v2360_v24  ;;  %v2026_v24 = vld [vmem:[#allocation5 + $0x8] ss:$24 sps:$4 sm:$0xff]  }
 0x195   :  { %1388 = vmatmul.mubr.bf16.vlgmr.msra.gmra.mrb[8].mxu0 %v2017_v47  ;;  %v2208_v47 = vmov 2475754826  }
 0x196   :  { %1811 = vmatpush3.bf16.msra.mxu0 %v2382_v49  ;;  %1505 = vmatprep.mubr.bf16.mxu0 %v2028_v48  ;;  %v1624_v49 = vld [vmem:[%s2967_s7] ss:$0 sm:$0xff] }
 0x197   :  { %1812 = vmatprep.subr.bf16.mxu0 %v2384_v52  ;;  %v410_v51 = vmul.f32 %v1624_v49, %v399_v50  ;;  %v1625_v52 = vld [vmem:[%s2967_s7 + $0x1] ss:$0 sm:$0xff]  ;;  %v2209_v50 = vmov 2131351028  }
 0x199   :  { %v2516_v54 = vadd.f32 %v1625_v52, %v410_v51 }
 0x19a   :  { %1813 = vmatpush3.bf16.msra.mxu0 %v2388_v53  ;;  %v404_v53 = vpop.permute.xlu0 %403 }
 0x19b   :  { %1814 = vmatprep.subr.bf16.mxu0 %v2391_v55  ;;  %v411_v55 = vmul.f32 %v1624_v49, %v404_v53  ;;  %v421_v57 = vand.u32 2139095040, %v2516_v54  ;;  %v418_v38 = vand.u32 2147483647, %v2516_v54 }
 0x19e   :  { %1815 = vmatpush3.bf16.msra.mxu0 %v2396_v58  ;;  %v2519_v58 = vadd.f32 %v1625_v52, %v411_v55 }
 0x19f   :  { %1816 = vmatprep.subr.bf16.mxu0 %v2399_v59 }
 0x1a0   :  { %v522_v55 = vand.u32 2147483647, %v2519_v58 }
 0x1a2   :  { %1817 = vmatpush3.bf16.msra.mxu0 %v2402_v60 }
 0x1a3   :  { %1818 = vmatprep.subr.bf16.mxu0 %v2405_v61 }
 0x1a6   :  { %1819 = vmatpush3.bf16.msra.mxu0 %v2408_v62 }
 0x1a7   :  { %1820 = vmatprep.subr.bf16.mxu0 %v2411_v63 }
 0x1aa   :  { %1821 = vmatpush3.bf16.msra.mxu0 %v2414_v0  ;;  %v422_v0 = vshrl.u32 %v421_v57, 23  ;;  %v425_v57 = vand.u32 8388607, %v418_v38 }
 0x1ab   :  { %1822 = vmatprep.subr.bf16.mxu0 %v2417_v1  ;;  %v525_v1 = vand.u32 2139095040, %v2519_v58 }
 0x1ae   :  { %1823 = vmatpush3.bf16.msra.mxu0 %v2420_v2  ;;  %v1626_v2 = vadd.s32 4294967169, %v422_v0 }
 0x1af   :  { %1824 = vmatprep.subr.bf16.mxu0 %v2423_v3  ;;  %v526_v3 = vshrl.u32 %v525_v1, 23 }
 0x1b0   :  { %v428_v5 = vadd.s32 1, %v1626_v2 }
 0x1b1   :  { %v1630_v6 = vadd.s32 4294967169, %v526_v3 }
 0x1b2   :  { %1825 = vmatpush3.bf16.msra.mxu0 %v2426_v4  ;;  %v628_v4 = vpop.permute.xlu1 %627  ;;  %vm429_vm13 = vcmp.gt.s32.totalorder %v428_v5, 0 }
 0x1b3   :  { %v634_v7 = vmul.f32 %v1624_v49, %v628_v4  ;;  %v532_v9 = vadd.s32 1, %v1630_v6  ;;  %v430_v10 = vsel %vm429_vm13, %v428_v5, 0 }
 0x1b4   :  { %v432_v13 = vand.u32 31, %v430_v10  ;;  %v2530_v21 = vshrl.u32 %v430_v10, 5  ;;  %v426_v10 = vor.u32 8388608, %v425_v57 }
 0x1b5   :  { %1506 = vmatmul.mubr.bf16.vlgmr.msra.gmra.mrb[12].mxu0 %v2026_v24  ;;  %v2522_v11 = vadd.f32 %v1625_v52, %v634_v7  ;;  %vm533_vm14 = vcmp.gt.s32.totalorder %v532_v9, 0  ;;  %v529_v7 = vand.u32 8388607, %v522_v55 }
 0x1b6   :  { %v632_v8 = vpop.permute.xlu1 %631  ;;  %v534_v16 = vsel %vm533_vm14, %v532_v9, 0  ;;  %v2527_v17 = vsub.s32 32, %v432_v13  ;;  %v444_v23 = vshll.u32 %v2204_v22, %v432_v13  ;;  %v447_v28 = vshll.u32 %v2205_v25, %v432_v13 }
 0x1b7   :  { %v635_v12 = vmul.f32 %v1624_v49, %v632_v8  ;;  %v641_v14 = vand.u32 2139095040, %v2522_v11  ;;  %v536_v18 = vand.u32 31, %v534_v16  ;;  %v2538_v31 = vshrl.u32 %v534_v16, 5 }
 0x1b8   :  { %v445_v26 = vshrl.u32 %v2205_v25, %v2527_v17  ;;  %vm453_vm15 = vcmp.lt.s32.totalorder %v2530_v21, 4  ;;  %v448_v37 = vshrl.u32 %v2206_v36, %v2527_v17  ;;  %v435_v46 = vshll.u32 %v2207_v32, %v432_v13 }
 0x1b9   :  { %v2525_v15 = vadd.f32 %v1625_v52, %v635_v12  ;;  %v642_v19 = vshrl.u32 %v641_v14, 23  ;;  %v2535_v27 = vsub.s32 32, %v536_v18  ;;  %v548_v34 = vshll.u32 %v2204_v22, %v536_v18 }
 0x1ba   :  { %v446_v41 = vor.u32 %v445_v26, %v444_v23  ;;  %v551_v43 = vshll.u32 %v2205_v25, %v536_v18  ;;  %v436_v48 = vshrl.u32 %v2208_v47, %v2527_v17  ;;  %v438_v24 = vshll.u32 %v2208_v47, %v432_v13 }
 0x1bb   :  { %v745_v20 = vand.u32 2139095040, %v2525_v15  ;;  %v1634_v29 = vadd.s32 4294967169, %v642_v19  ;;  %v549_v42 = vshrl.u32 %v2205_v25, %v2535_v27  ;;  %v552_v44 = vshrl.u32 %v2206_v36, %v2535_v27 }
 0x1bc   :  { %v439_v51 = vshrl.u32 %v2209_v50, %v2527_v17  ;;  %v441_v52 = vshll.u32 %v2209_v50, %v432_v13  ;;  %v442_v53 = vshrl.u32 %v2204_v22, %v2527_v17  ;;  %v546_v0 = vshrl.u32 %v2204_v22, %v2535_v27 }
 0x1bd   :  { %v746_v30 = vshrl.u32 %v745_v20, 23  ;;  %v550_v2 = vor.u32 %v549_v42, %v548_v34  ;;  %v553_v3 = vor.u32 %v552_v44, %v551_v43  ;;  %vm557_vm0 = vcmp.lt.s32.totalorder %v2538_v31, 4 }
 0x1be   :  { %v437_v4 = vor.u32 %v436_v48, %v435_v46  ;;  %v440_v5 = vor.u32 %v439_v51, %v438_v24  ;;  %v443_v6 = vor.u32 %v442_v53, %v441_v52  ;;  %v459_v8 = vsel %vm453_vm15, %v446_v41, 920167782 }
 0x1bf   :  { %v1638_v1 = vadd.s32 4294967169, %v746_v30  ;;  %vm450_vm1 = vcmp.lt.s32.totalorder %v2530_v21, 1  ;;  %vm452_vm2 = vcmp.lt.s32.totalorder %v2530_v21, 3  ;;  %v563_v16 = vsel %vm557_vm0, %v550_v2, 920167782 }
 0x1c0   :  { %vm554_vm3 = vcmp.lt.s32.totalorder %v2538_v31, 1  ;;  %vm556_vm4 = vcmp.lt.s32.totalorder %v2538_v31, 3  ;;  %vm451_vm5 = vcmp.lt.s32.totalorder %v2530_v21, 2  ;;  %v458_v19 = vsel %vm450_vm1, %v437_v4, %v440_v5 }
 0x1c1   :  { %v460_v20 = vsel %vm452_vm2, %v443_v6, %v459_v8  ;;  %v530_v23 = vor.u32 8388608, %v529_v7  ;;  %v648_v26 = vadd.s32 1, %v1634_v29  ;;  %vm555_vm6 = vcmp.lt.s32.totalorder %v2538_v31, 2 }
 0x1c2   :  { %v752_v42 = vadd.s32 1, %v1638_v1  ;;  %v434_v24 = vshrl.u32 %v2207_v32, %v2527_v17  ;;  %v455_v53 = vsel %vm453_vm15, %v443_v6, 2102212464 }
 0x1c3   :  { %v570_v43 = vshll.u32 %v530_v23, 8  ;;  %vm649_vm7 = vcmp.gt.s32.totalorder %v648_v26, 0  ;;  %v456_v1 = vsel %vm452_vm2, %v440_v5, %v455_v53 }
 0x1c4   :  { %v385_v56 = vpop.f32.mrb[0].mxu1  ;;  %vm753_vm8 = vcmp.gt.s32.totalorder %v752_v42, 0 }
 0x1c5   :  { %v1563_v59 = vmul.f32 0.33333334, %v385_v56  ;;  %v1892_v60 = vpop.f32.mrb[1].mxu1  ;;  %v449_v56 = vor.u32 %v448_v37, %v447_v28  ;;  %v462_v28 = vsel %vm450_vm1, %v440_v5, %v443_v6  ;;  %v461_v37 = vsel %vm451_vm5, %v458_v19, %v460_v20 }
 0x1c6   :  { %v388_v61 = vpop.f32.mrb[2].mxu1  ;;  %v540_v60 = vshrl.u32 %v2208_v47, %v2535_v27 }
 0x1c7   :  { %1565 = vst [vmem:[#allocation11 + $0x8] sm:$0xff] %v1563_v59  ;;  %v1564_v62 = vmul.f32 0.33333334, %v388_v61  ;;  %v1893_v63 = vpop.f32.mrb[3].mxu1  ;;  %v539_v59 = vshll.u32 %v2207_v32, %v536_v18  ;;  %v542_v61 = vshll.u32 %v2208_v47, %v536_v18  ;;  %v463_v9 = vsel %vm453_vm15, %v449_v56, 1326507024 }
 0x1c8   :  { %v545_v63 = vshll.u32 %v2209_v50, %v536_v18  ;;  %v567_v18 = vsel %vm557_vm0, %v553_v3, 1326507024  ;;  %v464_v30 = vsel %vm452_vm2, %v446_v41, %v463_v9 }
 0x1c9   :  { %1566 = vst [vmem:[#allocation11 + $0x20] sm:$0xff] %v1564_v62  ;;  %v543_v62 = vshrl.u32 %v2209_v50, %v2535_v27  ;;  %v541_v12 = vor.u32 %v540_v60, %v539_v59  ;;  %v465_v41 = vsel %vm451_vm5, %v462_v28, %v464_v30  ;;  %v650_v59 = vsel %vm649_vm7, %v648_v26, 0 }
 0x1ca   :  { %v547_v14 = vor.u32 %v546_v0, %v545_v63  ;;  %v538_v60 = vshrl.u32 %v2207_v32, %v2535_v27  ;;  %v754_v63 = vsel %vm753_vm8, %v752_v42, 0  ;;  %v454_v0 = vsel %vm450_vm1, %v434_v24, %v437_v4 }
 0x1cb   :  { %v544_v13 = vor.u32 %v543_v62, %v542_v61  ;;  %v756_v6 = vand.u32 31, %v754_v63  ;;  %v457_v7 = vsel %vm451_vm5, %v454_v0, %v456_v1  ;;  %v2669_v23 = vshrl.u32 %v754_v63, 5 }
 0x1cc   :  { %v559_v17 = vsel %vm557_vm0, %v547_v14, 2102212464  ;;  %v558_v3 = vsel %vm554_vm3, %v538_v60, %v541_v12  ;;  %v638_v30 = vand.u32 2147483647, %v2522_v11  ;;  %v742_v1 = vand.u32 2147483647, %v2525_v15 }
 0x1cd   :  { %v562_v34 = vsel %vm554_vm3, %v541_v12, %v544_v13  ;;  %v566_v29 = vsel %vm554_vm3, %v544_v13, %v547_v14  ;;  %v560_v27 = vsel %vm556_vm4, %v544_v13, %v559_v17  ;;  %v2660_v21 = vsub.s32 32, %v756_v6 }
 0x1ce   :  { %v561_v5 = vsel %vm555_vm6, %v558_v3, %v560_v27  ;;  %v771_v53 = vshll.u32 %v2205_v25, %v756_v6  ;;  %vm777_vm12 = vcmp.lt.s32.totalorder %v2669_v23, 4  ;;  %v645_v63 = vand.u32 8388607, %v638_v30 }
 0x1cf   :  { %v759_v3 = vshll.u32 %v2207_v32, %v756_v6  ;;  %vm774_vm0 = vcmp.lt.s32.totalorder %v2669_v23, 1  ;;  %vm776_vm1 = vcmp.lt.s32.totalorder %v2669_v23, 3  ;;  %vm775_vm2 = vcmp.lt.s32.totalorder %v2669_v23, 2 }
 0x1d0   :  { %vm420_vm7 = vcmp.lt.s32.totalorder %v2516_v54, 0 }
 0x1e4   :  { %v1760_v33 = vpop.f32.mrb[4].mxu1 }
 0x1e5   :  { %v1761_v35 = vpop.f32.mrb[5].mxu1 }
 0x1e6   :  { %v2545_v39 = vadd.f32 %v1761_v35, %v1760_v33  ;;  %v1763_v40 = vpop.f32.mrb[6].mxu1  ;;  %v466_v33 = vshll.u32 %v426_v10, 8  ;;  %v564_v35 = vsel %vm556_vm4, %v547_v14, %v563_v16  ;;  %v2656_v10 = vshrl.u32 %v650_v59, 5 }
 0x1e7   :  { %v1764_v45 = vpop.f32.mrb[7].mxu1  ;;  %v565_v44 = vsel %vm555_vm6, %v562_v34, %v564_v35 }
 0x1e8   :  { %v2556_v49 = vadd.f32 %v1764_v45, %v1763_v40  ;;  %v568_v40 = vsel %vm556_vm4, %v550_v2, %v567_v18  ;;  %v2614_v45 = vmul.u32.u64.low %v466_v33, %v461_v37  ;;  %v2615_v46 = vmul.u32.u64.high %v466_v33, %v461_v37, %v2614_v45 }
 0x1e9   :  { %v569_v48 = vsel %vm555_vm6, %v566_v29, %v568_v40  ;;  %v2622_v51 = vmul.u32.u64.low %v466_v33, %v465_v41  ;;  %v2623_v52 = vmul.u32.u64.high %v466_v33, %v465_v41, %v2622_v51  ;;  %v652_v2 = vand.u32 31, %v650_v59 }
 0x1ea   :  { %v2627_v56 = vmul.u32.u64.low %v570_v43, %v565_v44  ;;  %v2628_v57 = vmul.u32.u64.high %v570_v43, %v565_v44, %v2627_v56  ;;  %v2633_v61 = vmul.u32.u64.low %v570_v43, %v569_v48  ;;  %v2634_v62 = vmul.u32.u64.high %v570_v43, %v569_v48, %v2633_v61 }
 0x1eb   :  { %v476_v8 = vadd.s32 1, %v2615_v46  ;;  %vm475_vm9 = vc.u32 %v2623_v52, %v2614_v45  ;;  %v2651_v4 = vsub.s32 32, %v652_v2  ;;  %v473_v12 = vmul.u32 %v466_v33, %v457_v7 }
 0x1ec   :  { %v580_v9 = vadd.s32 1, %v2628_v57  ;;  %vm579_vm10 = vc.u32 %v2634_v62, %v2627_v56  ;;  %v664_v14 = vshll.u32 %v2204_v22, %v652_v2  ;;  %v667_v16 = vshll.u32 %v2205_v25, %v652_v2 }
 0x1ed   :  { %v477_v13 = vsel %vm475_vm9, %v476_v8, %v2615_v46  ;;  %v577_v18 = vmul.u32 %v570_v43, %v561_v5  ;;  %v665_v31 = vshrl.u32 %v2205_v25, %v2651_v4  ;;  %v668_v20 = vshrl.u32 %v2206_v36, %v2651_v4 }
 0x1ee   :  { %v581_v26 = vsel %vm579_vm10, %v580_v9, %v2628_v57  ;;  %vm673_vm11 = vcmp.lt.s32.totalorder %v2656_v10, 4  ;;  %v2674_v33 = vadd.s32 %v477_v13, %v473_v12  ;;  %v768_v37 = vshll.u32 %v2204_v22, %v756_v6 }
 0x1ef   :  { %v769_v29 = vshrl.u32 %v2205_v25, %v2660_v21  ;;  %v655_v40 = vshll.u32 %v2207_v32, %v652_v2  ;;  %v656_v42 = vshrl.u32 %v2208_v47, %v2651_v4  ;;  %v658_v43 = vshll.u32 %v2208_v47, %v652_v2 }
 0x1f0   :  { %v659_v44 = vshrl.u32 %v2209_v50, %v2651_v4  ;;  %v582_v46 = vadd.s32 %v581_v26, %v577_v18  ;;  %v666_v24 = vor.u32 %v665_v31, %v664_v14  ;;  %v669_v51 = vor.u32 %v668_v20, %v667_v16 }
 0x1f1   :  { %v772_v57 = vshrl.u32 %v2206_v36, %v2660_v21  ;;  %v661_v59 = vshll.u32 %v2209_v50, %v652_v2  ;;  %v662_v60 = vshrl.u32 %v2204_v22, %v2651_v4  ;;  %v479_v61 = vadd.s32 536870912, %v2674_v33 }
 0x1f2   :  { %v770_v17 = vor.u32 %v769_v29, %v768_v37  ;;  %v657_v0 = vor.u32 %v656_v42, %v655_v40  ;;  %v660_v25 = vor.u32 %v659_v44, %v658_v43  ;;  %v760_v36 = vshrl.u32 %v2208_v47, %v2660_v21 }
 0x1f3   :  { %v583_v27 = vadd.s32 536870912, %v582_v46  ;;  %v762_v2 = vshll.u32 %v2208_v47, %v756_v6  ;;  %v763_v7 = vshrl.u32 %v2209_v50, %v2660_v21  ;;  %v765_v8 = vshll.u32 %v2209_v50, %v756_v6 }
 0x1f4   :  { %v766_v5 = vshrl.u32 %v2204_v22, %v2660_v21  ;;  %v679_v9 = vsel %vm673_vm11, %v666_v24, 920167782  ;;  %v663_v12 = vor.u32 %v662_v60, %v661_v59  ;;  %vm670_vm13 = vcmp.lt.s32.totalorder %v2656_v10, 1 }
 0x1f5   :  { %v2712_v13 = vshrl.u32 %v479_v61, 30  ;;  %v683_v14 = vsel %vm673_vm11, %v669_v51, 1326507024  ;;  %v773_v47 = vor.u32 %v772_v57, %v771_v53  ;;  %vm672_vm14 = vcmp.lt.s32.totalorder %v2656_v10, 3 }
 0x1f6   :  { %v749_v50 = vand.u32 8388607, %v742_v1  ;;  %v783_v22 = vsel %vm777_vm12, %v770_v17, 920167782  ;;  %v646_v6 = vor.u32 8388608, %v645_v63  ;;  %vm671_vm15 = vcmp.lt.s32.totalorder %v2656_v10, 2 }
 0x1f7   :  { %v2722_v16 = vshrl.u32 %v583_v27, 30  ;;  %v678_v18 = vsel %vm670_vm13, %v657_v0, %v660_v25  ;;  %v764_v31 = vor.u32 %v763_v7, %v762_v2  ;;  %v767_v20 = vor.u32 %v766_v5, %v765_v8 }
 0x1f8   :  { %v680_v26 = vsel %vm672_vm14, %v663_v12, %v679_v9  ;;  %v682_v37 = vsel %vm670_vm13, %v660_v25, %v663_v12  ;;  %v684_v29 = vsel %vm672_vm14, %v666_v24, %v683_v14  ;;  %v750_v40 = vor.u32 8388608, %v749_v50 }
 0x1f9   :  { %v686_v42 = vshll.u32 %v646_v6, 8  ;;  %v681_v43 = vsel %vm671_vm15, %v678_v18, %v680_v26  ;;  %v784_v51 = vsel %vm776_vm1, %v767_v20, %v783_v22  ;;  %v685_v53 = vsel %vm671_vm15, %v682_v37, %v684_v29 }
 0x1fa   :  { %v786_v57 = vsel %vm774_vm0, %v764_v31, %v767_v20  ;;  %v654_v60 = vshrl.u32 %v2207_v32, %v2651_v4  ;;  %v675_v61 = vsel %vm673_vm11, %v663_v12, 2102212464  ;;  %v790_v63 = vshll.u32 %v750_v40, 8 }
 0x1fb   :  { %v2766_v2 = vmul.u32.u64.low %v686_v42, %v685_v53  ;;  %v2767_v7 = vmul.u32.u64.high %v686_v42, %v685_v53, %v2766_v2  ;;  %v676_v5 = vsel %vm672_vm14, %v660_v25, %v675_v61  ;;  %v779_v22 = vsel %vm777_vm12, %v767_v20, 2102212464 }
 0x1fc   :  { %v674_v8 = vsel %vm670_vm13, %v654_v60, %v657_v0  ;;  %vm524_vm9 = vcmp.lt.s32.totalorder %v2519_v58, 0  ;;  %vm2847_vm10 = vcmp.le.f32.partialorder %v418_v38, 0.7853982 }
 0x1fd   :  { %v677_v25 = vsel %vm671_vm15, %v674_v8, %v676_v5 }
 0x1fe   :  { %v693_v20 = vmul.u32 %v686_v42, %v677_v25  ;;  %v578_v25 = vadd.s32 %v2627_v56, %v2634_v62 }
 0x204   :  { %v1804_v19 = vpop.f32.mrb[8].mxu1 }
 0x205   :  { %v1805_v28 = vpop.f32.mrb[9].mxu1 }
 0x206   :  { %v2676_v34 = vadd.f32 %v1805_v28, %v1804_v19  ;;  %v1807_v35 = vpop.f32.mrb[10].mxu1  ;;  %v761_v19 = vor.u32 %v760_v36, %v759_v3  ;;  %v481_v28 = vshll.u32 %v2712_v13, 30 }
 0x207   :  { %v1808_v41 = vpop.f32.mrb[11].mxu1  ;;  %v2758_v3 = vmul.u32.u64.low %v686_v42, %v681_v43  ;;  %v2759_v36 = vmul.u32.u64.high %v686_v42, %v681_v43, %v2758_v3 }
 0x208   :  { %v2687_v48 = vadd.f32 %v1808_v41, %v1807_v35  ;;  %v787_v35 = vsel %vm777_vm12, %v773_v47, 1326507024  ;;  %v585_v41 = vshll.u32 %v2722_v16, 30  ;;  %v782_v44 = vsel %vm774_vm0, %v761_v19, %v764_v31 }
 0x209   :  { %v2748_v24 = vsub.s32 %v2674_v33, %v481_v28  ;;  %v788_v59 = vsel %vm776_vm1, %v770_v17, %v787_v35  ;;  %v785_v33 = vsel %vm775_vm2, %v782_v44, %v784_v51  ;;  %v696_v6 = vadd.s32 1, %v2759_v36 }
 0x20a   :  { %v2764_v27 = vsub.s32 %v582_v46, %v585_v41  ;;  %v789_v17 = vsel %vm775_vm2, %v786_v57, %v788_v59  ;;  %v2776_v9 = vmul.u32.u64.low %v790_v63, %v785_v33  ;;  %v2777_v12 = vmul.u32.u64.high %v790_v63, %v785_v33, %v2776_v9 }
 0x20b   :  { %v484_v4 = vsub.s32 0, %v2748_v24  ;;  %v758_v46 = vshrl.u32 %v2207_v32, %v2660_v21  ;;  %v2782_v14 = vmul.u32.u64.low %v790_v63, %v789_v17  ;;  %v2783_v47 = vmul.u32.u64.high %v790_v63, %v789_v17, %v2782_v14 }
 0x20c   :  { %v588_v50 = vsub.s32 0, %v2764_v27  ;;  %v780_v32 = vsel %vm776_vm1, %v764_v31, %v779_v22  ;;  %vm695_vm3 = vc.u32 %v2767_v7, %v2758_v3  ;;  %v800_v10 = vadd.s32 1, %v2777_v12 }
 0x20d   :  { %v1627_v0 = vmin.u32 %v484_v4, %v2748_v24  ;;  %v778_v18 = vsel %vm774_vm0, %v758_v46, %v761_v19  ;;  %v697_v35 = vsel %vm695_vm3, %v696_v6, %v2759_v36  ;;  %vm799_vm4 = vc.u32 %v2783_v47, %v2776_v9 }
 0x20e   :  { %v1631_v21 = vmin.u32 %v588_v50, %v2764_v27  ;;  %v781_v28 = vsel %vm775_vm2, %v778_v18, %v780_v32  ;;  %v698_v44 = vadd.s32 %v697_v35, %v693_v20  ;;  %v801_v42 = vsel %vm799_vm4, %v800_v10, %v2777_v12 }
 0x20f   :  { %v486_v26 = vclz %v1627_v0  ;;  %v797_v40 = vmul.u32 %v790_v63, %v781_v28  ;;  %v474_v14 = vadd.s32 %v2614_v45, %v2623_v52  ;;  %vm2856_vm12 = vcmp.le.f32.partialorder %v522_v55, 0.7853982 }
 0x210   :  { %v590_v19 = vclz %v1631_v21  ;;  %v699_v61 = vadd.s32 536870912, %v698_v44  ;;  %v608_v55 = vsub.s32 4, %v2722_v16  ;;  %vm510_vm3 = vweird.f32 %v2516_v54 }
 0x211   :  { %v1628_v29 = vadd.s32 4294967294, %v486_v26  ;;  %v802_v60 = vadd.s32 %v801_v42, %v797_v40  ;;  %vm614_vm4 = vweird.f32 %v2519_v58 }
 0x212   :  { %v1632_v51 = vadd.s32 4294967294, %v590_v19  ;;  %v2818_v17 = vshrl.u32 %v699_v61, 30 }
 0x213   :  { %vm1629_vm5 = vcmp.lt.s32.totalorder %v1628_v29, 0  ;;  %v803_v2 = vadd.s32 536870912, %v802_v60 }
 0x214   :  { %vm1633_vm6 = vcmp.lt.s32.totalorder %v1632_v51, 0  ;;  %v489_v33 = vsel %vm1629_vm5, 0, %v1628_v29  ;;  %v701_v46 = vshll.u32 %v2818_v17, 30  ;;  %vm640_vm5 = vcmp.lt.s32.totalorder %v2522_v11, 0 }
 0x215   :  { %v593_v4 = vsel %vm1633_vm6, 0, %v1632_v51  ;;  %v494_v8 = vsub.s32 4294967266, %v489_v33  ;;  %v2820_v5 = vshrl.u32 %v803_v2, 30  ;;  %v490_v50 = vsub.s32 32, %v489_v33 }
 0x216   :  { %v598_v12 = vsub.s32 4294967266, %v593_v4  ;;  %v594_v6 = vsub.s32 32, %v593_v4  ;;  %v2828_v32 = vsub.s32 %v698_v44, %v701_v46  ;;  %v491_v21 = vshll.u32 %v2748_v24, %v489_v33 }
 0x217   :  { %v495_v22 = vadd.s32 127, %v494_v8  ;;  %v805_v0 = vshll.u32 %v2820_v5, 30  ;;  %v492_v26 = vshrl.u32 %v474_v14, %v490_v50  ;;  %v595_v10 = vshll.u32 %v2764_v27, %v593_v4 }
 0x218   :  { %v599_v18 = vadd.s32 127, %v598_v12  ;;  %v596_v45 = vshrl.u32 %v578_v25, %v594_v6  ;;  %v704_v35 = vsub.s32 0, %v2828_v32  ;;  %v2842_v12 = vld [vmem:[%s2966_s6] ss:$0 sm:$0xff]  ;;  %vm744_vm6 = vcmp.lt.s32.totalorder %v2525_v15, 0  ;;  %s2210_s6 = smov [#allocation11]  }
 0x219   :  { %v496_v20 = vshll.u32 %v495_v22, 23  ;;  %v2831_v28 = vsub.s32 %v802_v60, %v805_v0  ;;  %v493_v19 = vor.u32 %v492_v26, %v491_v21  ;;  %s1580_s11 = sshll.u32 %s2210_s6, 4  ;;  %s1581_s11 = int_to_ptr.vmem [resolvable:$true] %s1580_s11 }
 0x21a   :  { %v600_v52 = vshll.u32 %v599_v18, 23  ;;  %v597_v62 = vor.u32 %v596_v45, %v595_v10  ;;  %v1635_v29 = vmin.u32 %v704_v35, %v2828_v32  ;;  %s2155_s12 = scalar_lea.vmem %s1581_s11, 768  ;;  %p2160_p13 = scmp.lt.s32.totalorder %s1581_s11, %s1581_s11 }
 0x21b   :  { %v808_v56 = vsub.s32 0, %v2831_v28  ;;  %v500_v24 = vcvt.s32.f32 %v493_v19  ;;  %p2156_p12 = scmp.ne.s32.totalorder %s1581_s11, %s2155_s12  ;;  %p2161_p0 = scmp.lt.s32.totalorder %s2155_s12, %s2155_s12 }
 0x21c   :  { %v604_v42 = vcvt.s32.f32 %v597_v62 }
 0x21d   :  { %p2162_p1 = por %p2161_p0, %p2160_p13 }
 0x21f   :  { %p2163_p2 = pnand %p2162_p1, %p2156_p12 }
 0x224   :  { %v1848_v37 = vpop.f32.mrb[12].mxu1 }
 0x225   :  { %v1849_v31 = vpop.f32.mrb[13].mxu1 }
 0x226   :  { %v2805_v41 = vadd.f32 %v1849_v31, %v1848_v37  ;;  %v1851_v43 = vpop.f32.mrb[14].mxu1  ;;  %v497_v37 = vor.u32 4788187, %v496_v20  ;;  %v601_v31 = vor.u32 4788187, %v600_v52  ;;  %v504_v20 = vsub.s32 4, %v2712_v13 }
 0x227   :  { %v1852_v23 = vpop.f32.mrb[15].mxu1 }
 0x228   :  { %v2808_v53 = vadd.f32 %v1852_v23, %v1851_v43  ;;  %v2810_v57 = vpop.f32.mrb[0].mxu0  ;;  %v498_v40 = vand.u32 2147483647, %v497_v37  ;;  %v1639_v43 = vmin.u32 %v808_v56, %v2831_v28  ;;  %v602_v44 = vand.u32 2147483647, %v601_v31 }
 0x229   :  { %v2812_v59 = vpop.f32.mrb[1].mxu0  ;;  %v706_v23 = vclz %v1635_v29  ;;  %v505_v62 = vsel %vm420_vm7, %v504_v20, %v2712_v13  ;;  %v609_v31 = vsel %vm524_vm9, %v608_v55, %v2722_v16  ;;  %v694_v29 = vadd.s32 %v2758_v3, %v2767_v7 }
 0x22a   :  { %v2814_v36 = vpop.f32.mrb[2].mxu0  ;;  %v501_v27 = vmul.f32 %v500_v24, %v498_v40  ;;  %v810_v51 = vclz %v1639_v43  ;;  %v605_v60 = vmul.f32 %v604_v42, %v602_v44  ;;  %v507_v24 = vsel %vm2847_vm10, 0, %v505_v62 }
 0x22b   :  { %v2816_v63 = vpop.f32.mrb[3].mxu0  ;;  %v1636_v61 = vadd.s32 4294967294, %v706_v23  ;;  %v798_v43 = vadd.s32 %v2776_v9, %v2783_v47  ;;  %v611_v42 = vsel %vm2856_vm12, 0, %v609_v31  ;;  %v511_v23 = vadd.s32 3, %v507_v24 }
 0x22c   :  { %v502_v33 = vxor.u32 2147483648, %v501_v27  ;;  %v1640_v4 = vadd.s32 4294967294, %v810_v51  ;;  %v606_v8 = vxor.u32 2147483648, %v605_v60 }
 0x22d   :  { %vm1637_vm8 = vcmp.lt.s32.totalorder %v1636_v61, 0 }
 0x22e   :  { %v503_v0 = vsel %vm420_vm7, %v502_v33, %v501_v27  ;;  %v709_v21 = vsel %vm1637_vm8, 0, %v1636_v61  ;;  %vm1641_vm11 = vcmp.lt.s32.totalorder %v1640_v4, 0  ;;  %v607_v38 = vsel %vm524_vm9, %v606_v8, %v605_v60 }
 0x22f   :  { %v506_v10 = vsel %vm2847_vm10, %v2516_v54, %v503_v0  ;;  %v813_v35 = vsel %vm1641_vm11, 0, %v1640_v4  ;;  %v610_v19 = vsel %vm2856_vm12, %v2519_v58, %v607_v38  ;;  %v714_v56 = vsub.s32 4294967266, %v709_v21 }
 0x230   :  { %2029 = vcosq.f32 %v506_v10  ;;  %v710_v40 = vsub.s32 32, %v709_v21  ;;  %v814_v13 = vsub.s32 32, %v813_v35  ;;  %v711_v16 = vshll.u32 %v2828_v32, %v709_v21 }
 0x231   :  { %2031 = vsinq.f32 %v506_v10  ;;  %v615_v60 = vadd.s32 3, %v611_v42  ;;  %v815_v7 = vshll.u32 %v2831_v28, %v813_v35  ;;  %v512_v4 = vand.u32 3, %v511_v23 }
 0x232   :  { %2033 = vcosq.f32 %v610_v19  ;;  %v712_v27 = vshrl.u32 %v694_v29, %v710_v40  ;;  %v816_v61 = vshrl.u32 %v798_v43, %v814_v13  ;;  %vm2901_vm7 = vcmp.le.f32.partialorder %v638_v30, 0.7853982 }
 0x233   :  { %2035 = vsinq.f32 %v610_v19  ;;  %vm514_vm13 = vcmp.eq.s32.totalorder %v512_v4, 0  ;;  %vm517_vm14 = vcmp.eq.s32.totalorder %v512_v4, 2  ;;  %vm513_vm15 = vcmp.lt.s32.totalorder %v512_v4, 2 }
 0x234   :  { %v713_v9 = vor.u32 %v712_v27, %v711_v16  ;;  %v817_v0 = vor.u32 %v816_v61, %v815_v7  ;;  %vm2911_vm8 = vcmp.le.f32.partialorder %v742_v1, 0.7853982  ;;  %v828_v7 = vsub.s32 4, %v2820_v5 }
 0x236   :  { %v824_v20 = vcvt.s32.f32 %v817_v0 }
 0x23a   :  { %v2030_v3 = vpop.eup %2029 }
 0x23b   :  { %v518_v22 = vxor.u32 2147483648, %v2030_v3 }
 0x248   :  { %v1738_v2 = vpop.f32.mrb[4].mxu0 }
 0x249   :  { %v1739_v46 = vpop.f32.mrb[5].mxu0 }
 0x24a   :  { %v1740_v14 = vadd.f32 %v1739_v46, %v1738_v2  ;;  %v1741_v50 = vpop.f32.mrb[6].mxu0  ;;  %v2032_v2 = vpop.eup %2031 }
 0x24b   :  { %v1742_v25 = vpop.f32.mrb[7].mxu0  ;;  %v2034_v8 = vpop.eup %2033  ;;  %v519_v26 = vsel %vm517_vm14, %v518_v22, %v2032_v2 }
 0x24c   :  { %v1308_v6 = vadd.f32 %v1740_v14, %v2842_v12  ;;  %v1743_v18 = vadd.f32 %v1742_v25, %v1741_v50  ;;  %v2036_v46 = vpop.eup %2035  ;;  %v616_v14 = vand.u32 3, %v615_v60  ;;  %v515_v50 = vxor.u32 2147483648, %v2032_v2 }
 0x24d   :  { %v622_v21 = vxor.u32 2147483648, %v2034_v8 }
 0x24e   :  { %v2867_v45 = vadd.f32 %v2545_v39, %v1308_v6  ;;  %v1311_v52 = vadd.f32 %v1743_v18, %v2842_v12  ;;  %v818_v39 = vsub.s32 4294967266, %v813_v35  ;;  %v720_v6 = vcvt.s32.f32 %v713_v9 }
 0x24f   :  { %v619_v18 = vxor.u32 2147483648, %v2036_v46  ;;  %vm618_vm0 = vcmp.eq.s32.totalorder %v616_v14, 0  ;;  %vm621_vm1 = vcmp.eq.s32.totalorder %v616_v14, 2  ;;  %v516_v28 = vsel %vm514_vm13, %v2030_v3, %v515_v50 }
 0x250   :  { %v2875_v37 = vadd.f32 %v2556_v49, %v1311_v52  ;;  %v715_v49 = vadd.s32 127, %v714_v56  ;;  %v819_v44 = vadd.s32 127, %v818_v39  ;;  %vm617_vm2 = vcmp.lt.s32.totalorder %v616_v14, 2 }
 0x251   :  { %v620_v52 = vsel %vm618_vm0, %v2034_v8, %v619_v18  ;;  %v623_v35 = vsel %vm621_vm1, %v622_v21, %v2036_v46  ;;  %v520_v55 = vsel %vm513_vm15, %v516_v28, %v519_v26  ;;  %vm730_vm15 = vweird.f32 %v2522_v11 }
 0x252   :  { %v716_v51 = vshll.u32 %v715_v49, 23  ;;  %v820_v33 = vshll.u32 %v819_v44, 23  ;;  %v624_v56 = vsel %vm617_vm2, %v620_v52, %v623_v35  ;;  %v521_v31 = vsel %vm510_vm3, nan, %v520_v55 }
 0x253   :  { %v625_v43 = vsel %vm614_vm4, nan, %v624_v56  ;;  %v1555_v44 = vadd.f32 %v521_v31, %v2812_v59  ;;  %vm834_vm0 = vweird.f32 %v2525_v15  ;;  %v1467_v52 = vadd.f32 %v2676_v34, %v2842_v12 }
 0x254   :  { %v717_v47 = vor.u32 4788187, %v716_v51  ;;  %v821_v25 = vor.u32 4788187, %v820_v33  ;;  %v1556_v16 = vadd.f32 %v625_v43, %v2816_v63  ;;  %v829_v33 = vsel %vm744_vm6, %v828_v7, %v2820_v5 }
 0x255   :  { %v831_v4 = vsel %vm2911_vm8, 0, %v829_v33 }
 0x256   :  { %v718_v32 = vand.u32 2147483647, %v717_v47  ;;  %v822_v38 = vand.u32 2147483647, %v821_v25  ;;  %v835_v9 = vadd.s32 3, %v831_v4 }
 0x258   :  { %v721_v10 = vmul.f32 %v720_v6, %v718_v32  ;;  %v825_v19 = vmul.f32 %v824_v20, %v822_v38  ;;  %v836_v22 = vand.u32 3, %v835_v9 }
 0x25a   :  { %v722_v39 = vxor.u32 2147483648, %v721_v10  ;;  %v826_v24 = vxor.u32 2147483648, %v825_v19  ;;  %vm838_vm11 = vcmp.eq.s32.totalorder %v836_v22, 0  ;;  %vm841_vm12 = vcmp.eq.s32.totalorder %v836_v22, 2 }
 0x25b   :  { %vm837_vm14 = vcmp.lt.s32.totalorder %v836_v22, 2 }
 0x25c   :  { %v723_v23 = vsel %vm640_vm5, %v722_v39, %v721_v10  ;;  %v827_v30 = vsel %vm744_vm6, %v826_v24, %v825_v19 }
 0x25d   :  { %v726_v60 = vsel %vm2901_vm7, %v2522_v11, %v723_v23  ;;  %v830_v1 = vsel %vm2911_vm8, %v2525_v15, %v827_v30 }
 0x25e   :  { %2037 = vcosq.f32 %v726_v60 }
 0x25f   :  { %2039 = vsinq.f32 %v726_v60 }
 0x260   :  { %2041 = vcosq.f32 %v830_v1 }
 0x261   :  { %2043 = vsinq.f32 %v830_v1 }
 0x268   :  { %v1782_v62 = vpop.f32.mrb[8].mxu0  ;;  %v2038_v47 = vpop.eup %2037 }
 0x269   :  { %v1783_v29 = vpop.f32.mrb[9].mxu0  ;;  %v2040_v46 = vpop.eup %2039  ;;  %v738_v25 = vxor.u32 2147483648, %v2038_v47 }
 0x26a   :  { %v1784_v40 = vadd.f32 %v1783_v29, %v1782_v62  ;;  %v1785_v49 = vpop.f32.mrb[10].mxu0  ;;  %v735_v0 = vxor.u32 2147483648, %v2040_v46  ;;  %v1470_v62 = vadd.f32 %v2687_v48, %v2842_v12 }
 0x26b   :  { %v1786_v13 = vpop.f32.mrb[11].mxu0 }
 0x26c   :  { %v1390_v54 = vadd.f32 %v1784_v40, %v2867_v45  ;;  %v1787_v42 = vadd.f32 %v1786_v13, %v1785_v49  ;;  %v724_v45 = vsub.s32 4, %v2818_v17 }
 0x26e   :  { %v1557_v27 = vadd.f32 %v1555_v44, %v1390_v54  ;;  %v1393_v51 = vadd.f32 %v1787_v42, %v2875_v37  ;;  %v725_v61 = vsel %vm640_vm5, %v724_v45, %v2818_v17  ;;  %v2042_v17 = vpop.eup %2041 }
 0x26f   :  { %v727_v2 = vsel %vm2901_vm7, 0, %v725_v61  ;;  %v2044_v50 = vpop.eup %2043  ;;  %v842_v32 = vxor.u32 2147483648, %v2042_v17 }
 0x270   :  { %v1559_v3 = vmul.f32 0.33333334, %v1557_v27  ;;  %v1558_v63 = vadd.f32 %v1556_v16, %v1393_v51  ;;  %v731_v8 = vadd.s32 3, %v727_v2  ;;  %v839_v5 = vxor.u32 2147483648, %v2044_v50 }
 0x271   :  { %v843_v28 = vsel %vm841_vm12, %v842_v32, %v2044_v50 }
 0x272   :  { %1561 = vst [vmem:[#allocation11] sm:$0xff] %v1559_v3  ;;  %v1560_v37 = vmul.f32 0.33333334, %v1558_v63  ;;  %v732_v14 = vand.u32 3, %v731_v8  ;;  %v840_v21 = vsel %vm838_vm11, %v2042_v17, %v839_v5 }
 0x273   :  { %v844_v10 = vsel %vm837_vm14, %v840_v21, %v843_v28 }
 0x274   :  { %1562 = vst [vmem:[#allocation11 + $0x18] sm:$0xff] %v1560_v37  ;;  %vm734_vm9 = vcmp.eq.s32.totalorder %v732_v14, 0  ;;  %vm737_vm10 = vcmp.eq.s32.totalorder %v732_v14, 2  ;;  %vm733_vm13 = vcmp.lt.s32.totalorder %v732_v14, 2  ;;  %v845_v29 = vsel %vm834_vm0, nan, %v844_v10 }
 0x275   :  { %v736_v6 = vsel %vm734_vm9, %v2038_v47, %v735_v0  ;;  %v739_v18 = vsel %vm737_vm10, %v738_v25, %v2040_v46  ;;  %v1568_v15 = vadd.f32 %v2814_v36, %v845_v29 }
 0x276   :  { %v740_v26 = vsel %vm733_vm13, %v736_v6, %v739_v18 }
 0x277   :  { %v741_v19 = vsel %vm730_vm15, nan, %v740_v26 }
 0x278   :  { %v1567_v11 = vadd.f32 %v2810_v57, %v741_v19 }
 0x288   :  { %v1826_v38 = vpop.f32.mrb[12].mxu0 }
 0x289   :  { %v1827_v20 = vpop.f32.mrb[13].mxu0 }
 0x28a   :  { %v1828_v35 = vadd.f32 %v1827_v20, %v1826_v38  ;;  %v1829_v55 = vpop.f32.mrb[14].mxu0 }
 0x28b   :  { %v1830_v56 = vpop.f32.mrb[15].mxu0 }
 0x28c   :  { %v1508_v39 = vadd.f32 %v1828_v35, %v1467_v52  ;;  %v1831_v31 = vadd.f32 %v1830_v56, %v1829_v55 }
 0x28e   :  { %v1549_v40 = vadd.f32 %v2805_v41, %v1508_v39  ;;  %v1511_v49 = vadd.f32 %v1831_v31, %v1470_v62 }
 0x290   :  { %v1569_v24 = vadd.f32 %v1567_v11, %v1549_v40  ;;  %v1552_v34 = vadd.f32 %v2808_v53, %v1511_v49 }
 0x292   :  { %v1571_v43 = vmul.f32 0.33333334, %v1569_v24  ;;  %v1570_v13 = vadd.f32 %v1568_v15, %v1552_v34 }
 0x294   :  { %1573 = vst [vmem:[#allocation11 + $0x10] sm:$0xff] %v1571_v43  ;;  %v1572_v44 = vmul.f32 0.33333334, %v1570_v13 }
 0x296   :  { %1574 = vst [vmem:[#allocation11 + $0x28] sm:$0xff] %v1572_v44 }
 0x297   :  { %2166 = shalt.err (!%p2163_p2)
}
 0x298   :  { %s2167_s22 = scalar_lea.hbm %s2968_s8, 768 }
 0x299   :  { %p2168_p3 = scmp.ne.s32.totalorder %s2968_s8, %s2167_s22  ;;  %p2171_p4 = scmp.lt.u32.totalorder %s2167_s22, %s2968_s8 }
 0x29b   :  { %p2173_p5 = pnand %p2171_p4, %p2168_p3 }
 0x29d   :  { %2176 = shalt.err (!%p2173_p5)
}
 0x29e   :  { %1586 = dma.vmem_to_hbm [thread:$0]  %s1581_s11, 768, %s2968_s8, [#allocation4], %s2186_s15, %s2186_s15, %s2187_s16  }
 0x29f   :  { %2183 = dma.done.wait [#allocation4], 768  }
 0x2a0   :  { %2184 = vsyncadd [#allocation4], 4294966528 }
 0x2a1   :  { %1590 = vsyncpa [#allocation3], 1 }
 0x2a2   :  { %1591 = vsyncpa [#allocation6], 1 }
 0x2a3   :  { %1592 = vsyncpa [#allocation9], 1 }
 0x2a4   :  { %1593 = vsyncpa [#allocation4], 1 }

</bundles_post_ra>
